<compile_context>
chip_gen: v7x
topology: tpu7x:2x2x1
jax: 0.10.0
libtpu: 0.0.40
codegen_flags: <defaults>
</compile_context>

<pallas_src>
import collections
import functools

import jax
import jax.numpy as jnp
from jax import lax
from jax.experimental import pallas as pl
from jax.experimental.pallas import tpu as pltpu


_HwConfig = collections.namedtuple(
    "_HwConfig", ["vmem_limit_bytes", "num_tensorcores", "bf16_eup"])


@functools.lru_cache(maxsize=None)
def _hw_config():
    """Generation-aware VMEM budget / TC count / EUP dtype, with safe fallbacks."""
    kind = ""
    try:
        kind = jax.devices()[0].device_kind.lower()
    except Exception:
        pass
    is_v7 = ("7x" in kind) or ("v7" in kind) or ("tpu7" in kind)
    is_v6 = "v6" in kind

    vmem_cap = None
    try:
        vmem_cap = int(pltpu.get_tpu_info().vmem_capacity_bytes)
    except Exception:
        vmem_cap = None
    if not vmem_cap or vmem_cap <= 0:
        vmem_cap = (64 if is_v7 else 128) * 1024 * 1024
    # Leave headroom for compiler-internal scratch; 128 MiB parts get ~96-100 MiB.
    vmem_limit = min(int(vmem_cap * 0.75), 100 * 1024 * 1024)

    num_tc = 2 if is_v7 else 1        # v7x: 2 TensorCores per chip share "parallel" axes
    bf16_eup = is_v6 or is_v7         # v5e EUP has no bf16 path
    return _HwConfig(vmem_limit, num_tc, bf16_eup)


def _pick_block(n, target, multiple):
    """Largest block <= target that divides n and is a multiple of `multiple`.
    Falls back to the full dimension (always a legal block shape)."""
    if n <= target:
        return n
    for c in range(target, multiple - 1, -1):
        if n % c == 0 and c % multiple == 0:
            return c
    return n


def _pick_chunk(n, target):
    """Largest divisor of n that is <= target (timesteps per grid step)."""
    for c in range(min(n, target), 0, -1):
        if n % c == 0:
            return c
    return 1


# ---------------------------------------------------------------------------
# Generic tiled  (M,K)@(K,N) + bias  kernel (input projection & vocab fc).
# ---------------------------------------------------------------------------
def _matmul_bias_kernel(a_ref, w_ref, b_ref, out_ref):
    acc = jnp.dot(a_ref[...], w_ref[...], preferred_element_type=jnp.float32)
    out_ref[...] = (acc + b_ref[...]).astype(out_ref.dtype)


def matmul_bias_pallas(a, w, b, *, out_dtype=jnp.float32):
    """a: (M, K) bf16, w: (K, N) bf16, b: (1, N) f32 -> (M, N) out_dtype."""
    M, K = a.shape
    _, N = w.shape
    cfg = _hw_config()
    # tm: multiple of 16 (bf16 row packing), target 512 -> fewer W re-streams.
    tm = _pick_block(M, 512, 16)
    tn = _pick_block(N, 256, 128)

    return pl.pallas_call(
        _matmul_bias_kernel,
        out_shape=jax.ShapeDtypeStruct((M, N), out_dtype),
        grid_spec=pltpu.PrefetchScalarGridSpec(
            num_scalar_prefetch=0,
            grid=(pl.cdiv(M, tm), pl.cdiv(N, tn)),
            in_specs=[
                pl.BlockSpec((tm, K), lambda i, j: (i, 0)),
                pl.BlockSpec((K, tn), lambda i, j: (0, j)),
                pl.BlockSpec((1, tn), lambda i, j: (0, j)),
            ],
            out_specs=pl.BlockSpec((tm, tn), lambda i, j: (i, j)),
        ),
        compiler_params=pltpu.CompilerParams(
            dimension_semantics=("parallel", "parallel"),
            vmem_limit_bytes=cfg.vmem_limit_bytes),
    )(a, w, b)


# ---------------------------------------------------------------------------
# LSTM recurrence: only h @ W_hh^T and gate math on the serial path.
# Input gates_in already contains  x_t @ W_ih^T + b_ih + b_hh  (bf16).
# Gate column order: [i, f, o, g]  (one sigmoid slab + one tanh slab).
# ---------------------------------------------------------------------------
def _lstm_recurrence_kernel(gates_ref, whh_ref, hs_ref, h_sc, c_sc, *,
                            hidden_size, chunk, nl_dtype):
    t_chunk = pl.program_id(1)   # time-chunk axis ("arbitrary", carries state)

    @pl.when(t_chunk == 0)
    def _():
        h_sc[...] = jnp.zeros_like(h_sc)
        c_sc[...] = jnp.zeros_like(c_sc)

    H = hidden_size
    whh = whh_ref[...]                               # (H, 4H) bf16, resident

    def step(t, carry):
        h, c = carry                                 # (tb, H) f32
        gates = gates_ref[t] + jnp.dot(h.astype(jnp.bfloat16), whh,
                                       preferred_element_type=jnp.float32)
        g_nl = gates.astype(nl_dtype)                # bf16 EUP on v6e/v7x, f32 on v5e
        sig = jax.nn.sigmoid(g_nl[:, 0:3 * H])       # i, f, o in one contiguous slab
        i_g = sig[:, 0 * H:1 * H]
        f_g = sig[:, 1 * H:2 * H]
        o_g = sig[:, 2 * H:3 * H]
        g_g = jnp.tanh(g_nl[:, 3 * H:4 * H])
        c_new = (f_g * c + i_g * g_g).astype(jnp.float32)          # f32 carry
        h_new = (o_g * jnp.tanh(c_new.astype(nl_dtype))).astype(jnp.float32)
        hs_ref[t] = h_new.astype(hs_ref.dtype)
        return h_new, c_new

    h, c = lax.fori_loop(0, chunk, step, (h_sc[...], c_sc[...]),
                         unroll=(True if chunk <= 8 else 4))
    h_sc[...] = h
    c_sc[...] = c


def _recurrence_vmem_bytes(tb, tc, H, gate_bytes, out_bytes):
    G = 4 * H
    gates = 2 * tc * tb * G * gate_bytes   # double-buffered gates chunk
    outs = 2 * tc * tb * H * out_bytes     # double-buffered hs output chunk
    whh = 2 * H * G * 2                    # W_hh^T bf16 (default double-buffered)
    state = 2 * tb * H * 4                 # h, c f32 scratch
    return gates + outs + whh + state


def _fit_recurrence_tiles(B, T, H, tb, budget, gate_bytes, out_bytes):
    """Shrink tc (then tb) until the recurrence tile plan fits the VMEM budget."""
    while True:
        tc = _pick_chunk(T, 16)
        while tc > 1 and _recurrence_vmem_bytes(tb, tc, H, gate_bytes, out_bytes) > budget:
            tc = _pick_chunk(T, tc - 1)
        if _recurrence_vmem_bytes(tb, tc, H, gate_bytes, out_bytes) <= budget:
            return tb, tc
        new_tb = _pick_block(B, max(8, tb // 2), 8)
        if new_tb >= tb:
            return tb, tc          # cannot shrink further; let the compiler cope
        tb = new_tb


def lstm_recurrence_pallas(gates_in, w_hh_t, *, out_dtype=jnp.bfloat16):
    """gates_in: (T, B, 4H) bf16; w_hh_t: (H, 4H) bf16 -> hs: (T, B, H) out_dtype."""
    T, B, G = gates_in.shape
    H = w_hh_t.shape[0]
    cfg = _hw_config()

    # Batch block: full batch on single-TC chips (v5e/v6e), B/2 on v7x so the
    # "parallel" axis puts exactly one block on each TensorCore.
    if cfg.num_tensorcores >= 2 and B % 2 == 0 and (B // 2) % 8 == 0:
        tb = B // 2
    else:
        tb = B

    tb, tc = _fit_recurrence_tiles(
        B, T, H, tb,
        budget=int(cfg.vmem_limit_bytes * 0.7),
        gate_bytes=gates_in.dtype.itemsize,
        out_bytes=jnp.dtype(out_dtype).itemsize)

    nl_dtype = jnp.bfloat16 if cfg.bf16_eup else jnp.float32
    kernel = functools.partial(_lstm_recurrence_kernel, hidden_size=H,
                               chunk=tc, nl_dtype=nl_dtype)

    # TODO(synk): single-buffer the constant W_hh block (pl.Buffered(1)) to
    # reclaim H*4H*2 bytes of VMEM once verified on the target jax version.
    return pl.pallas_call(
        kernel,
        out_shape=jax.ShapeDtypeStruct((T, B, H), out_dtype),
        grid_spec=pltpu.PrefetchScalarGridSpec(
            num_scalar_prefetch=0,
            grid=(pl.cdiv(B, tb), T // tc),
            in_specs=[
                pl.BlockSpec((tc, tb, G), lambda b, t: (t, b, 0)),   # gates chunk
                pl.BlockSpec((H, G), lambda b, t: (0, 0)),           # W_hh^T
            ],
            out_specs=pl.BlockSpec((tc, tb, H), lambda b, t: (t, b, 0)),
            scratch_shapes=[
                pltpu.VMEM((tb, H), jnp.float32),   # h state (f32)
                pltpu.VMEM((tb, H), jnp.float32),   # c state (f32)
            ],
        ),
        compiler_params=pltpu.CompilerParams(
            dimension_semantics=("parallel", "arbitrary"),
            vmem_limit_bytes=cfg.vmem_limit_bytes),
    )(gates_in, w_hh_t)


# ---------------------------------------------------------------------------
# Params + forward wrapper
# ---------------------------------------------------------------------------
def init_params(key, embed_size, hidden_size, vocab_size):
    ks = jax.random.split(key, 7)
    s = 1.0 / jnp.sqrt(jnp.float32(hidden_size))
    u = lambda k, shape: jax.random.uniform(k, shape, jnp.float32, -s, s)
    H = hidden_size
    return {
        # embedding table kept in bf16 (MXU-friendly, halves gather bandwidth)
        "embedding": jax.random.normal(
            ks[0], (vocab_size, embed_size), jnp.float32).astype(jnp.bfloat16),
        # LSTM weights stored transposed + bf16, gate-column order [i, f, o, g]
        # (permute the 4H axis from PyTorch's [i, f, g, o] when importing).
        "w_ih_t": u(ks[1], (embed_size, 4 * H)).astype(jnp.bfloat16),
        "w_hh_t": u(ks[2], (H, 4 * H)).astype(jnp.bfloat16),
        # b_ih + b_hh pre-added (f32)
        "b_gates": u(ks[3], (1, 4 * H)) + u(ks[4], (1, 4 * H)),
        "w_fc_t": u(ks[5], (H, vocab_size)).astype(jnp.bfloat16),
        "b_fc": u(ks[6], (1, vocab_size)),
    }


def decoder_rnn_forward(params, features, captions):
    """features: (B, E) float32; captions: (B, T) int32. Returns (B, T, V) float32."""
    B, E = features.shape
    T = captions.shape[1]
    H = params["w_hh_t"].shape[0]
    V = params["w_fc_t"].shape[1]

    # Build the time-major input sequence directly (only the tiny int id tensor
    # is transposed):  x[0] = features, x[1:] = embed(captions[:, :-1]).
    ids_tm = jnp.transpose(captions[:, :-1], (1, 0))                  # (T-1, B)
    embeds = jnp.take(params["embedding"], ids_tm, axis=0)            # (T-1, B, E) bf16
    x_tbe = jnp.concatenate(
        [features[None].astype(jnp.bfloat16), embeds], axis=0)        # (T, B, E) bf16
    # TODO(synk): for very large vocab, fuse the embedding gather into the
    # input-projection kernel via scalar-prefetched ids instead of jnp.take.

    # 1) input projection hoisted out of the recurrence (one big MXU matmul),
    #    gates_in kept in bf16 to halve HBM traffic of the largest intermediate.
    gates_in = matmul_bias_pallas(
        x_tbe.reshape(T * B, E), params["w_ih_t"], params["b_gates"],
        out_dtype=jnp.bfloat16).reshape(T, B, 4 * H)

    # 2) sequential LSTM recurrence (only h @ W_hh on the serial path).
    hs = lstm_recurrence_pallas(gates_in, params["w_hh_t"])           # (T, B, H) bf16

    # 3) dropout: eval-mode identity.
    # 4) vocab projection.  Transpose the SMALL bf16 hs (T,B,H) -> (B,T,H) so the
    #    big (B*T, V) f32 logits reshape to (B,T,V) for free (no logits transpose).
    hs_bt = jnp.transpose(hs, (1, 0, 2)).reshape(B * T, H)
    logits = matmul_bias_pallas(
        hs_bt, params["w_fc_t"], params["b_fc"],
        out_dtype=jnp.float32).reshape(B, T, V)

    # TODO(synk): for tiny problem sizes, fuse all three stages into a single
    # pallas_call to avoid per-call overhead and HBM intermediates.
    return logits                                                     # (B, T, V)


if __name__ == "__main__":
    B, E, H, V, T = 8, 32, 32, 128, 8

    key = jax.random.PRNGKey(0)
    k_params, k_feat, k_cap = jax.random.split(key, 3)

    params = init_params(k_params, E, H, V)
    features = jax.random.normal(k_feat, (B, E), jnp.float32)
    captions = jax.random.randint(k_cap, (B, T), 0, V, dtype=jnp.int32)

    out = jax.jit(decoder_rnn_forward)(params, features, captions)
    out = jax.block_until_ready(out)

    assert out.shape == (B, T, V), out.shape
    assert out.dtype == jnp.float32
    assert bool(jnp.all(jnp.isfinite(out)))
    print("KERNEL_OK")
</pallas_src>

<mosaic_0001>
module attributes {stable_mosaic.version = 11 : i64} {
  func.func @_matmul_bias_kernel(%arg0: i32, %arg1: i32, %arg2: memref<64x32xbf16, #tpu.memory_space<vmem>>, %arg3: memref<32x128xbf16, #tpu.memory_space<vmem>>, %arg4: memref<1x128xf32, #tpu.memory_space<vmem>>, %arg5: memref<64x128xbf16, #tpu.memory_space<vmem>>) attributes {dimension_semantics = [#tpu.dimension_semantics<parallel>, #tpu.dimension_semantics<parallel>], iteration_bounds = array<i64: 1, 1>, scalar_prefetch = 0 : i64, scratch_operands = 0 : i64, tpu.core_type = #tpu.core_type<tc>, window_params = [{transform_indices = @transform_0, window_bounds = array<i64: 64, 32>}, {transform_indices = @transform_1, window_bounds = array<i64: 32, 128>}, {transform_indices = @transform_2, window_bounds = array<i64: 1, 128>}, {transform_indices = @transform_3, window_bounds = array<i64: 64, 128>}]} {
    %c0 = arith.constant 0 : index
    %c0_0 = arith.constant 0 : index
    %0 = vector.load %arg2[%c0, %c0_0] : memref<64x32xbf16, #tpu.memory_space<vmem>>, vector<64x32xbf16>
    %c0_1 = arith.constant 0 : index
    %c0_2 = arith.constant 0 : index
    %1 = vector.load %arg3[%c0_1, %c0_2] : memref<32x128xbf16, #tpu.memory_space<vmem>>, vector<32x128xbf16>
    %cst = arith.constant dense<0.000000e+00> : vector<64x128xf32>
    %2 = tpu.matmul %0, %1, %cst {dimension_numbers = #tpu.dot_dimension_numbers<[1], [0], [0], [1], [0, 0, 1, 1], [], []>} : vector<64x32xbf16>, vector<32x128xbf16>, vector<64x128xf32> -> vector<64x128xf32>
    %c0_3 = arith.constant 0 : index
    %c0_4 = arith.constant 0 : index
    %3 = vector.load %arg4[%c0_3, %c0_4] : memref<1x128xf32, #tpu.memory_space<vmem>>, vector<1x128xf32>
    %4 = vector.broadcast %3 : vector<1x128xf32> to vector<64x128xf32>
    %5 = arith.addf %2, %4 : vector<64x128xf32>
    %6 = arith.truncf %5 : vector<64x128xf32> to vector<64x128xbf16>
    %c0_5 = arith.constant 0 : index
    %c0_6 = arith.constant 0 : index
    %7 = vector.load %arg5[%c0_5, %c0_6] : memref<64x128xbf16, #tpu.memory_space<vmem>>, vector<64x128xbf16>
    tpu.vector_store %arg5[%c0_5, %c0_6], %6 {strides = array<i32>} : memref<64x128xbf16, #tpu.memory_space<vmem>>, vector<64x128xbf16>,
    return
  }
  func.func @transform_0(%arg0: i32, %arg1: i32) -> (i32, i32) {
    %c0_i32 = arith.constant 0 : i32
    %c0_i32_0 = arith.constant 0 : i32
    return %arg0, %c0_i32 : i32, i32
  }
  func.func @transform_1(%arg0: i32, %arg1: i32) -> (i32, i32) {
    %c0_i32 = arith.constant 0 : i32
    %c0_i32_0 = arith.constant 0 : i32
    return %c0_i32, %arg1 : i32, i32
  }
  func.func @transform_2(%arg0: i32, %arg1: i32) -> (i32, i32) {
    %c0_i32 = arith.constant 0 : i32
    %c0_i32_0 = arith.constant 0 : i32
    return %c0_i32, %arg1 : i32, i32
  }
  func.func @transform_3(%arg0: i32, %arg1: i32) -> (i32, i32) {
    %c0_i32 = arith.constant 0 : i32
    return %arg0, %arg1 : i32, i32
  }
}

module attributes {stable_mosaic.version = 11 : i64} {
  func.func @_matmul_bias_kernel(%arg0: i32, %arg1: i32, %arg2: memref<64x32xbf16, #tpu.memory_space<vmem>>, %arg3: memref<32x128xbf16, #tpu.memory_space<vmem>>, %arg4: memref<1x128xf32, #tpu.memory_space<vmem>>, %arg5: memref<64x128xf32, #tpu.memory_space<vmem>>) attributes {dimension_semantics = [#tpu.dimension_semantics<parallel>, #tpu.dimension_semantics<parallel>], iteration_bounds = array<i64: 1, 1>, scalar_prefetch = 0 : i64, scratch_operands = 0 : i64, tpu.core_type = #tpu.core_type<tc>, window_params = [{transform_indices = @transform_0, window_bounds = array<i64: 64, 32>}, {transform_indices = @transform_1, window_bounds = array<i64: 32, 128>}, {transform_indices = @transform_2, window_bounds = array<i64: 1, 128>}, {transform_indices = @transform_3, window_bounds = array<i64: 64, 128>}]} {
    %c0 = arith.constant 0 : index
    %c0_0 = arith.constant 0 : index
    %0 = vector.load %arg2[%c0, %c0_0] : memref<64x32xbf16, #tpu.memory_space<vmem>>, vector<64x32xbf16>
    %c0_1 = arith.constant 0 : index
    %c0_2 = arith.constant 0 : index
    %1 = vector.load %arg3[%c0_1, %c0_2] : memref<32x128xbf16, #tpu.memory_space<vmem>>, vector<32x128xbf16>
    %cst = arith.constant dense<0.000000e+00> : vector<64x128xf32>
    %2 = tpu.matmul %0, %1, %cst {dimension_numbers = #tpu.dot_dimension_numbers<[1], [0], [0], [1], [0, 0, 1, 1], [], []>} : vector<64x32xbf16>, vector<32x128xbf16>, vector<64x128xf32> -> vector<64x128xf32>
    %c0_3 = arith.constant 0 : index
    %c0_4 = arith.constant 0 : index
    %3 = vector.load %arg4[%c0_3, %c0_4] : memref<1x128xf32, #tpu.memory_space<vmem>>, vector<1x128xf32>
    %4 = vector.broadcast %3 : vector<1x128xf32> to vector<64x128xf32>
    %5 = arith.addf %2, %4 : vector<64x128xf32>
    %c0_5 = arith.constant 0 : index
    %c0_6 = arith.constant 0 : index
    %6 = vector.load %arg5[%c0_5, %c0_6] : memref<64x128xf32, #tpu.memory_space<vmem>>, vector<64x128xf32>
    tpu.vector_store %arg5[%c0_5, %c0_6], %5 {strides = array<i32>} : memref<64x128xf32, #tpu.memory_space<vmem>>, vector<64x128xf32>,
    return
  }
  func.func @transform_0(%arg0: i32, %arg1: i32) -> (i32, i32) {
    %c0_i32 = arith.constant 0 : i32
    %c0_i32_0 = arith.constant 0 : i32
    return %arg0, %c0_i32 : i32, i32
  }
  func.func @transform_1(%arg0: i32, %arg1: i32) -> (i32, i32) {
    %c0_i32 = arith.constant 0 : i32
    %c0_i32_0 = arith.constant 0 : i32
    return %c0_i32, %arg1 : i32, i32
  }
  func.func @transform_2(%arg0: i32, %arg1: i32) -> (i32, i32) {
    %c0_i32 = arith.constant 0 : i32
    %c0_i32_0 = arith.constant 0 : i32
    return %c0_i32, %arg1 : i32, i32
  }
  func.func @transform_3(%arg0: i32, %arg1: i32) -> (i32, i32) {
    %c0_i32 = arith.constant 0 : i32
    return %arg0, %arg1 : i32, i32
  }
}

module attributes {stable_mosaic.version = 11 : i64} {
  func.func @_lstm_recurrence_kernel(%arg0: i32, %arg1: i32, %arg2: memref<8x8x128xbf16, #tpu.memory_space<vmem>>, %arg3: memref<32x128xbf16, #tpu.memory_space<vmem>>, %arg4: memref<8x8x32xbf16, #tpu.memory_space<vmem>>, %arg5: memref<8x32xf32, #tpu.memory_space<vmem>>, %arg6: memref<8x32xf32, #tpu.memory_space<vmem>>) attributes {dimension_semantics = [#tpu.dimension_semantics<parallel>, #tpu.dimension_semantics<arbitrary>], iteration_bounds = array<i64: 1, 1>, scalar_prefetch = 0 : i64, scratch_operands = 2 : i64, tpu.core_type = #tpu.core_type<tc>, window_params = [{transform_indices = @transform_0, window_bounds = array<i64: 8, 8, 128>}, {pipeline_mode = #tpu.pipeline_mode<synchronous>, transform_indices = @transform_1, window_bounds = array<i64: 32, 128>}, {transform_indices = @transform_2, window_bounds = array<i64: 8, 8, 32>}]} {
    %c0_i32 = arith.constant 0 : i32
    %0 = arith.cmpi eq, %arg1, %c0_i32 : i32
    %1 = arith.extui %0 : i1 to i32
    %c0_i32_0 = arith.constant 0 : i32
    %2 = arith.cmpi ne, %1, %c0_i32_0 : i32
    scf.if %2 {
      %cst_58 = arith.constant 0.000000e+00 : f32
      %232 = vector.broadcast %cst_58 : f32 to vector<8x32xf32>
      %c0_59 = arith.constant 0 : index
      %c0_60 = arith.constant 0 : index
      %233 = vector.load %arg5[%c0_59, %c0_60] : memref<8x32xf32, #tpu.memory_space<vmem>>, vector<8x32xf32>
      tpu.vector_store %arg5[%c0_59, %c0_60], %232 {strides = array<i32>} : memref<8x32xf32, #tpu.memory_space<vmem>>, vector<8x32xf32>,
      %cst_61 = arith.constant 0.000000e+00 : f32
      %234 = vector.broadcast %cst_61 : f32 to vector<8x32xf32>
      %c0_62 = arith.constant 0 : index
      %c0_63 = arith.constant 0 : index
      %235 = vector.load %arg6[%c0_62, %c0_63] : memref<8x32xf32, #tpu.memory_space<vmem>>, vector<8x32xf32>
      tpu.vector_store %arg6[%c0_62, %c0_63], %234 {strides = array<i32>} : memref<8x32xf32, #tpu.memory_space<vmem>>, vector<8x32xf32>,
    } else {
    }
    %c0 = arith.constant 0 : index
    %c0_1 = arith.constant 0 : index
    %3 = vector.load %arg3[%c0, %c0_1] : memref<32x128xbf16, #tpu.memory_space<vmem>>, vector<32x128xbf16>
    %c0_2 = arith.constant 0 : index
    %c0_3 = arith.constant 0 : index
    %4 = vector.load %arg5[%c0_2, %c0_3] : memref<8x32xf32, #tpu.memory_space<vmem>>, vector<8x32xf32>
    %c0_4 = arith.constant 0 : index
    %c0_5 = arith.constant 0 : index
    %5 = vector.load %arg6[%c0_4, %c0_5] : memref<8x32xf32, #tpu.memory_space<vmem>>, vector<8x32xf32>
    %c0_i32_6 = arith.constant 0 : i32
    %6 = arith.index_cast %c0_i32_6 : i32 to index
    %c0_7 = arith.constant 0 : index
    %c0_8 = arith.constant 0 : index
    %7 = vector.load %arg2[%6, %c0_7, %c0_8] : memref<8x8x128xbf16, #tpu.memory_space<vmem>>, vector<1x8x128xbf16>
    %8 = vector.shape_cast %7 : vector<1x8x128xbf16> to vector<8x128xbf16>
    %9 = arith.truncf %4 : vector<8x32xf32> to vector<8x32xbf16>
    %cst = arith.constant dense<0.000000e+00> : vector<8x128xf32>
    %10 = tpu.matmul %9, %3, %cst {dimension_numbers = #tpu.dot_dimension_numbers<[1], [0], [0], [1], [0, 0, 1, 1], [], []>} : vector<8x32xbf16>, vector<32x128xbf16>, vector<8x128xf32> -> vector<8x128xf32>
    %11 = arith.extf %8 : vector<8x128xbf16> to vector<8x128xf32>
    %12 = arith.addf %11, %10 : vector<8x128xf32>
    %13 = vector.extract_strided_slice %12 {offsets = [0, 0], sizes = [8, 96], strides = [1, 1]} : vector<8x128xf32> to vector<8x96xf32>
    %14 = arith.negf %13 : vector<8x96xf32>
    %15 = math.exp %14 : vector<8x96xf32>
    %cst_9 = arith.constant 1.000000e+00 : f32
    %16 = vector.broadcast %cst_9 : f32 to vector<8x96xf32>
    %17 = arith.addf %16, %15 : vector<8x96xf32>
    %18 = arith.divf %16, %17 : vector<8x96xf32>
    %19 = vector.extract_strided_slice %18 {offsets = [0, 0], sizes = [8, 32], strides = [1, 1]} : vector<8x96xf32> to vector<8x32xf32>
    %20 = vector.extract_strided_slice %18 {offsets = [0, 32], sizes = [8, 32], strides = [1, 1]} : vector<8x96xf32> to vector<8x32xf32>
    %21 = vector.extract_strided_slice %18 {offsets = [0, 64], sizes = [8, 32], strides = [1, 1]} : vector<8x96xf32> to vector<8x32xf32>
    %22 = vector.extract_strided_slice %12 {offsets = [0, 96], sizes = [8, 32], strides = [1, 1]} : vector<8x128xf32> to vector<8x32xf32>
    %23 = math.tanh %22 : vector<8x32xf32>
    %24 = arith.mulf %20, %5 : vector<8x32xf32>
    %25 = arith.mulf %19, %23 : vector<8x32xf32>
    %26 = arith.addf %24, %25 : vector<8x32xf32>
    %27 = math.tanh %26 : vector<8x32xf32>
    %28 = arith.mulf %21, %27 : vector<8x32xf32>
    %29 = arith.truncf %28 : vector<8x32xf32> to vector<8x32xbf16>
    %30 = arith.index_cast %c0_i32_6 : i32 to index
    %c0_10 = arith.constant 0 : index
    %c0_11 = arith.constant 0 : index
    %31 = vector.load %arg4[%30, %c0_10, %c0_11] : memref<8x8x32xbf16, #tpu.memory_space<vmem>>, vector<1x8x32xbf16>
    %32 = vector.shape_cast %31 : vector<1x8x32xbf16> to vector<8x32xbf16>
    %33 = vector.shape_cast %29 : vector<8x32xbf16> to vector<1x8x32xbf16>
    tpu.vector_store %arg4[%30, %c0_10, %c0_11], %33 {strides = array<i32>} : memref<8x8x32xbf16, #tpu.memory_space<vmem>>, vector<1x8x32xbf16>,
    %c1_i32 = arith.constant 1 : i32
    %34 = arith.index_cast %c1_i32 : i32 to index
    %c0_12 = arith.constant 0 : index
    %c0_13 = arith.constant 0 : index
    %35 = vector.load %arg2[%34, %c0_12, %c0_13] : memref<8x8x128xbf16, #tpu.memory_space<vmem>>, vector<1x8x128xbf16>
    %36 = vector.shape_cast %35 : vector<1x8x128xbf16> to vector<8x128xbf16>
    %37 = arith.truncf %28 : vector<8x32xf32> to vector<8x32xbf16>
    %cst_14 = arith.constant dense<0.000000e+00> : vector<8x128xf32>
    %38 = tpu.matmul %37, %3, %cst_14 {dimension_numbers = #tpu.dot_dimension_numbers<[1], [0], [0], [1], [0, 0, 1, 1], [], []>} : vector<8x32xbf16>, vector<32x128xbf16>, vector<8x128xf32> -> vector<8x128xf32>
    %39 = arith.extf %36 : vector<8x128xbf16> to vector<8x128xf32>
    %40 = arith.addf %39, %38 : vector<8x128xf32>
    %41 = vector.extract_strided_slice %40 {offsets = [0, 0], sizes = [8, 96], strides = [1, 1]} : vector<8x128xf32> to vector<8x96xf32>
    %42 = arith.negf %41 : vector<8x96xf32>
    %43 = math.exp %42 : vector<8x96xf32>
    %cst_15 = arith.constant 1.000000e+00 : f32
    %44 = vector.broadcast %cst_15 : f32 to vector<8x96xf32>
    %45 = arith.addf %44, %43 : vector<8x96xf32>
    %46 = arith.divf %44, %45 : vector<8x96xf32>
    %47 = vector.extract_strided_slice %46 {offsets = [0, 0], sizes = [8, 32], strides = [1, 1]} : vector<8x96xf32> to vector<8x32xf32>
    %48 = vector.extract_strided_slice %46 {offsets = [0, 32], sizes = [8, 32], strides = [1, 1]} : vector<8x96xf32> to vector<8x32xf32>
    %49 = vector.extract_strided_slice %46 {offsets = [0, 64], sizes = [8, 32], strides = [1, 1]} : vector<8x96xf32> to vector<8x32xf32>
    %50 = vector.extract_strided_slice %40 {offsets = [0, 96], sizes = [8, 32], strides = [1, 1]} : vector<8x128xf32> to vector<8x32xf32>
    %51 = math.tanh %50 : vector<8x32xf32>
    %52 = arith.mulf %48, %26 : vector<8x32xf32>
    %53 = arith.mulf %47, %51 : vector<8x32xf32>
    %54 = arith.addf %52, %53 : vector<8x32xf32>
    %55 = math.tanh %54 : vector<8x32xf32>
    %56 = arith.mulf %49, %55 : vector<8x32xf32>
    %57 = arith.truncf %56 : vector<8x32xf32> to vector<8x32xbf16>
    %58 = arith.index_cast %c1_i32 : i32 to index
    %c0_16 = arith.constant 0 : index
    %c0_17 = arith.constant 0 : index
    %59 = vector.load %arg4[%58, %c0_16, %c0_17] : memref<8x8x32xbf16, #tpu.memory_space<vmem>>, vector<1x8x32xbf16>
    %60 = vector.shape_cast %59 : vector<1x8x32xbf16> to vector<8x32xbf16>
    %61 = vector.shape_cast %57 : vector<8x32xbf16> to vector<1x8x32xbf16>
    tpu.vector_store %arg4[%58, %c0_16, %c0_17], %61 {strides = array<i32>} : memref<8x8x32xbf16, #tpu.memory_space<vmem>>, vector<1x8x32xbf16>,
    %c2_i32 = arith.constant 2 : i32
    %62 = arith.index_cast %c2_i32 : i32 to index
    %c0_18 = arith.constant 0 : index
    %c0_19 = arith.constant 0 : index
    %63 = vector.load %arg2[%62, %c0_18, %c0_19] : memref<8x8x128xbf16, #tpu.memory_space<vmem>>, vector<1x8x128xbf16>
    %64 = vector.shape_cast %63 : vector<1x8x128xbf16> to vector<8x128xbf16>
    %65 = arith.truncf %56 : vector<8x32xf32> to vector<8x32xbf16>
    %cst_20 = arith.constant dense<0.000000e+00> : vector<8x128xf32>
    %66 = tpu.matmul %65, %3, %cst_20 {dimension_numbers = #tpu.dot_dimension_numbers<[1], [0], [0], [1], [0, 0, 1, 1], [], []>} : vector<8x32xbf16>, vector<32x128xbf16>, vector<8x128xf32> -> vector<8x128xf32>
    %67 = arith.extf %64 : vector<8x128xbf16> to vector<8x128xf32>
    %68 = arith.addf %67, %66 : vector<8x128xf32>
    %69 = vector.extract_strided_slice %68 {offsets = [0, 0], sizes = [8, 96], strides = [1, 1]} : vector<8x128xf32> to vector<8x96xf32>
    %70 = arith.negf %69 : vector<8x96xf32>
    %71 = math.exp %70 : vector<8x96xf32>
    %cst_21 = arith.constant 1.000000e+00 : f32
    %72 = vector.broadcast %cst_21 : f32 to vector<8x96xf32>
    %73 = arith.addf %72, %71 : vector<8x96xf32>
    %74 = arith.divf %72, %73 : vector<8x96xf32>
    %75 = vector.extract_strided_slice %74 {offsets = [0, 0], sizes = [8, 32], strides = [1, 1]} : vector<8x96xf32> to vector<8x32xf32>
    %76 = vector.extract_strided_slice %74 {offsets = [0, 32], sizes = [8, 32], strides = [1, 1]} : vector<8x96xf32> to vector<8x32xf32>
    %77 = vector.extract_strided_slice %74 {offsets = [0, 64], sizes = [8, 32], strides = [1, 1]} : vector<8x96xf32> to vector<8x32xf32>
    %78 = vector.extract_strided_slice %68 {offsets = [0, 96], sizes = [8, 32], strides = [1, 1]} : vector<8x128xf32> to vector<8x32xf32>
    %79 = math.tanh %78 : vector<8x32xf32>
    %80 = arith.mulf %76, %54 : vector<8x32xf32>
    %81 = arith.mulf %75, %79 : vector<8x32xf32>
    %82 = arith.addf %80, %81 : vector<8x32xf32>
    %83 = math.tanh %82 : vector<8x32xf32>
    %84 = arith.mulf %77, %83 : vector<8x32xf32>
    %85 = arith.truncf %84 : vector<8x32xf32> to vector<8x32xbf16>
    %86 = arith.index_cast %c2_i32 : i32 to index
    %c0_22 = arith.constant 0 : index
    %c0_23 = arith.constant 0 : index
    %87 = vector.load %arg4[%86, %c0_22, %c0_23] : memref<8x8x32xbf16, #tpu.memory_space<vmem>>, vector<1x8x32xbf16>
    %88 = vector.shape_cast %87 : vector<1x8x32xbf16> to vector<8x32xbf16>
    %89 = vector.shape_cast %85 : vector<8x32xbf16> to vector<1x8x32xbf16>
    tpu.vector_store %arg4[%86, %c0_22, %c0_23], %89 {strides = array<i32>} : memref<8x8x32xbf16, #tpu.memory_space<vmem>>, vector<1x8x32xbf16>,
    %c3_i32 = arith.constant 3 : i32
    %90 = arith.index_cast %c3_i32 : i32 to index
    %c0_24 = arith.constant 0 : index
    %c0_25 = arith.constant 0 : index
    %91 = vector.load %arg2[%90, %c0_24, %c0_25] : memref<8x8x128xbf16, #tpu.memory_space<vmem>>, vector<1x8x128xbf16>
    %92 = vector.shape_cast %91 : vector<1x8x128xbf16> to vector<8x128xbf16>
    %93 = arith.truncf %84 : vector<8x32xf32> to vector<8x32xbf16>
    %cst_26 = arith.constant dense<0.000000e+00> : vector<8x128xf32>
    %94 = tpu.matmul %93, %3, %cst_26 {dimension_numbers = #tpu.dot_dimension_numbers<[1], [0], [0], [1], [0, 0, 1, 1], [], []>} : vector<8x32xbf16>, vector<32x128xbf16>, vector<8x128xf32> -> vector<8x128xf32>
    %95 = arith.extf %92 : vector<8x128xbf16> to vector<8x128xf32>
    %96 = arith.addf %95, %94 : vector<8x128xf32>
    %97 = vector.extract_strided_slice %96 {offsets = [0, 0], sizes = [8, 96], strides = [1, 1]} : vector<8x128xf32> to vector<8x96xf32>
    %98 = arith.negf %97 : vector<8x96xf32>
    %99 = math.exp %98 : vector<8x96xf32>
    %cst_27 = arith.constant 1.000000e+00 : f32
    %100 = vector.broadcast %cst_27 : f32 to vector<8x96xf32>
    %101 = arith.addf %100, %99 : vector<8x96xf32>
    %102 = arith.divf %100, %101 : vector<8x96xf32>
    %103 = vector.extract_strided_slice %102 {offsets = [0, 0], sizes = [8, 32], strides = [1, 1]} : vector<8x96xf32> to vector<8x32xf32>
    %104 = vector.extract_strided_slice %102 {offsets = [0, 32], sizes = [8, 32], strides = [1, 1]} : vector<8x96xf32> to vector<8x32xf32>
    %105 = vector.extract_strided_slice %102 {offsets = [0, 64], sizes = [8, 32], strides = [1, 1]} : vector<8x96xf32> to vector<8x32xf32>
    %106 = vector.extract_strided_slice %96 {offsets = [0, 96], sizes = [8, 32], strides = [1, 1]} : vector<8x128xf32> to vector<8x32xf32>
    %107 = math.tanh %106 : vector<8x32xf32>
    %108 = arith.mulf %104, %82 : vector<8x32xf32>
    %109 = arith.mulf %103, %107 : vector<8x32xf32>
    %110 = arith.addf %108, %109 : vector<8x32xf32>
    %111 = math.tanh %110 : vector<8x32xf32>
    %112 = arith.mulf %105, %111 : vector<8x32xf32>
    %113 = arith.truncf %112 : vector<8x32xf32> to vector<8x32xbf16>
    %114 = arith.index_cast %c3_i32 : i32 to index
    %c0_28 = arith.constant 0 : index
    %c0_29 = arith.constant 0 : index
    %115 = vector.load %arg4[%114, %c0_28, %c0_29] : memref<8x8x32xbf16, #tpu.memory_space<vmem>>, vector<1x8x32xbf16>
    %116 = vector.shape_cast %115 : vector<1x8x32xbf16> to vector<8x32xbf16>
    %117 = vector.shape_cast %113 : vector<8x32xbf16> to vector<1x8x32xbf16>
    tpu.vector_store %arg4[%114, %c0_28, %c0_29], %117 {strides = array<i32>} : memref<8x8x32xbf16, #tpu.memory_space<vmem>>, vector<1x8x32xbf16>,
    %c4_i32 = arith.constant 4 : i32
    %118 = arith.index_cast %c4_i32 : i32 to index
    %c0_30 = arith.constant 0 : index
    %c0_31 = arith.constant 0 : index
    %119 = vector.load %arg2[%118, %c0_30, %c0_31] : memref<8x8x128xbf16, #tpu.memory_space<vmem>>, vector<1x8x128xbf16>
    %120 = vector.shape_cast %119 : vector<1x8x128xbf16> to vector<8x128xbf16>
    %121 = arith.truncf %112 : vector<8x32xf32> to vector<8x32xbf16>
    %cst_32 = arith.constant dense<0.000000e+00> : vector<8x128xf32>
    %122 = tpu.matmul %121, %3, %cst_32 {dimension_numbers = #tpu.dot_dimension_numbers<[1], [0], [0], [1], [0, 0, 1, 1], [], []>} : vector<8x32xbf16>, vector<32x128xbf16>, vector<8x128xf32> -> vector<8x128xf32>
    %123 = arith.extf %120 : vector<8x128xbf16> to vector<8x128xf32>
    %124 = arith.addf %123, %122 : vector<8x128xf32>
    %125 = vector.extract_strided_slice %124 {offsets = [0, 0], sizes = [8, 96], strides = [1, 1]} : vector<8x128xf32> to vector<8x96xf32>
    %126 = arith.negf %125 : vector<8x96xf32>
    %127 = math.exp %126 : vector<8x96xf32>
    %cst_33 = arith.constant 1.000000e+00 : f32
    %128 = vector.broadcast %cst_33 : f32 to vector<8x96xf32>
    %129 = arith.addf %128, %127 : vector<8x96xf32>
    %130 = arith.divf %128, %129 : vector<8x96xf32>
    %131 = vector.extract_strided_slice %130 {offsets = [0, 0], sizes = [8, 32], strides = [1, 1]} : vector<8x96xf32> to vector<8x32xf32>
    %132 = vector.extract_strided_slice %130 {offsets = [0, 32], sizes = [8, 32], strides = [1, 1]} : vector<8x96xf32> to vector<8x32xf32>
    %133 = vector.extract_strided_slice %130 {offsets = [0, 64], sizes = [8, 32], strides = [1, 1]} : vector<8x96xf32> to vector<8x32xf32>
    %134 = vector.extract_strided_slice %124 {offsets = [0, 96], sizes = [8, 32], strides = [1, 1]} : vector<8x128xf32> to vector<8x32xf32>
    %135 = math.tanh %134 : vector<8x32xf32>
    %136 = arith.mulf %132, %110 : vector<8x32xf32>
    %137 = arith.mulf %131, %135 : vector<8x32xf32>
    %138 = arith.addf %136, %137 : vector<8x32xf32>
    %139 = math.tanh %138 : vector<8x32xf32>
    %140 = arith.mulf %133, %139 : vector<8x32xf32>
    %141 = arith.truncf %140 : vector<8x32xf32> to vector<8x32xbf16>
    %142 = arith.index_cast %c4_i32 : i32 to index
    %c0_34 = arith.constant 0 : index
    %c0_35 = arith.constant 0 : index
    %143 = vector.load %arg4[%142, %c0_34, %c0_35] : memref<8x8x32xbf16, #tpu.memory_space<vmem>>, vector<1x8x32xbf16>
    %144 = vector.shape_cast %143 : vector<1x8x32xbf16> to vector<8x32xbf16>
    %145 = vector.shape_cast %141 : vector<8x32xbf16> to vector<1x8x32xbf16>
    tpu.vector_store %arg4[%142, %c0_34, %c0_35], %145 {strides = array<i32>} : memref<8x8x32xbf16, #tpu.memory_space<vmem>>, vector<1x8x32xbf16>,
    %c5_i32 = arith.constant 5 : i32
    %146 = arith.index_cast %c5_i32 : i32 to index
    %c0_36 = arith.constant 0 : index
    %c0_37 = arith.constant 0 : index
    %147 = vector.load %arg2[%146, %c0_36, %c0_37] : memref<8x8x128xbf16, #tpu.memory_space<vmem>>, vector<1x8x128xbf16>
    %148 = vector.shape_cast %147 : vector<1x8x128xbf16> to vector<8x128xbf16>
    %149 = arith.truncf %140 : vector<8x32xf32> to vector<8x32xbf16>
    %cst_38 = arith.constant dense<0.000000e+00> : vector<8x128xf32>
    %150 = tpu.matmul %149, %3, %cst_38 {dimension_numbers = #tpu.dot_dimension_numbers<[1], [0], [0], [1], [0, 0, 1, 1], [], []>} : vector<8x32xbf16>, vector<32x128xbf16>, vector<8x128xf32> -> vector<8x128xf32>
    %151 = arith.extf %148 : vector<8x128xbf16> to vector<8x128xf32>
    %152 = arith.addf %151, %150 : vector<8x128xf32>
    %153 = vector.extract_strided_slice %152 {offsets = [0, 0], sizes = [8, 96], strides = [1, 1]} : vector<8x128xf32> to vector<8x96xf32>
    %154 = arith.negf %153 : vector<8x96xf32>
    %155 = math.exp %154 : vector<8x96xf32>
    %cst_39 = arith.constant 1.000000e+00 : f32
    %156 = vector.broadcast %cst_39 : f32 to vector<8x96xf32>
    %157 = arith.addf %156, %155 : vector<8x96xf32>
    %158 = arith.divf %156, %157 : vector<8x96xf32>
    %159 = vector.extract_strided_slice %158 {offsets = [0, 0], sizes = [8, 32], strides = [1, 1]} : vector<8x96xf32> to vector<8x32xf32>
    %160 = vector.extract_strided_slice %158 {offsets = [0, 32], sizes = [8, 32], strides = [1, 1]} : vector<8x96xf32> to vector<8x32xf32>
    %161 = vector.extract_strided_slice %158 {offsets = [0, 64], sizes = [8, 32], strides = [1, 1]} : vector<8x96xf32> to vector<8x32xf32>
    %162 = vector.extract_strided_slice %152 {offsets = [0, 96], sizes = [8, 32], strides = [1, 1]} : vector<8x128xf32> to vector<8x32xf32>
    %163 = math.tanh %162 : vector<8x32xf32>
    %164 = arith.mulf %160, %138 : vector<8x32xf32>
    %165 = arith.mulf %159, %163 : vector<8x32xf32>
    %166 = arith.addf %164, %165 : vector<8x32xf32>
    %167 = math.tanh %166 : vector<8x32xf32>
    %168 = arith.mulf %161, %167 : vector<8x32xf32>
    %169 = arith.truncf %168 : vector<8x32xf32> to vector<8x32xbf16>
    %170 = arith.index_cast %c5_i32 : i32 to index
    %c0_40 = arith.constant 0 : index
    %c0_41 = arith.constant 0 : index
    %171 = vector.load %arg4[%170, %c0_40, %c0_41] : memref<8x8x32xbf16, #tpu.memory_space<vmem>>, vector<1x8x32xbf16>
    %172 = vector.shape_cast %171 : vector<1x8x32xbf16> to vector<8x32xbf16>
    %173 = vector.shape_cast %169 : vector<8x32xbf16> to vector<1x8x32xbf16>
    tpu.vector_store %arg4[%170, %c0_40, %c0_41], %173 {strides = array<i32>} : memref<8x8x32xbf16, #tpu.memory_space<vmem>>, vector<1x8x32xbf16>,
    %c6_i32 = arith.constant 6 : i32
    %174 = arith.index_cast %c6_i32 : i32 to index
    %c0_42 = arith.constant 0 : index
    %c0_43 = arith.constant 0 : index
    %175 = vector.load %arg2[%174, %c0_42, %c0_43] : memref<8x8x128xbf16, #tpu.memory_space<vmem>>, vector<1x8x128xbf16>
    %176 = vector.shape_cast %175 : vector<1x8x128xbf16> to vector<8x128xbf16>
    %177 = arith.truncf %168 : vector<8x32xf32> to vector<8x32xbf16>
    %cst_44 = arith.constant dense<0.000000e+00> : vector<8x128xf32>
    %178 = tpu.matmul %177, %3, %cst_44 {dimension_numbers = #tpu.dot_dimension_numbers<[1], [0], [0], [1], [0, 0, 1, 1], [], []>} : vector<8x32xbf16>, vector<32x128xbf16>, vector<8x128xf32> -> vector<8x128xf32>
    %179 = arith.extf %176 : vector<8x128xbf16> to vector<8x128xf32>
    %180 = arith.addf %179, %178 : vector<8x128xf32>
    %181 = vector.extract_strided_slice %180 {offsets = [0, 0], sizes = [8, 96], strides = [1, 1]} : vector<8x128xf32> to vector<8x96xf32>
    %182 = arith.negf %181 : vector<8x96xf32>
    %183 = math.exp %182 : vector<8x96xf32>
    %cst_45 = arith.constant 1.000000e+00 : f32
    %184 = vector.broadcast %cst_45 : f32 to vector<8x96xf32>
    %185 = arith.addf %184, %183 : vector<8x96xf32>
    %186 = arith.divf %184, %185 : vector<8x96xf32>
    %187 = vector.extract_strided_slice %186 {offsets = [0, 0], sizes = [8, 32], strides = [1, 1]} : vector<8x96xf32> to vector<8x32xf32>
    %188 = vector.extract_strided_slice %186 {offsets = [0, 32], sizes = [8, 32], strides = [1, 1]} : vector<8x96xf32> to vector<8x32xf32>
    %189 = vector.extract_strided_slice %186 {offsets = [0, 64], sizes = [8, 32], strides = [1, 1]} : vector<8x96xf32> to vector<8x32xf32>
    %190 = vector.extract_strided_slice %180 {offsets = [0, 96], sizes = [8, 32], strides = [1, 1]} : vector<8x128xf32> to vector<8x32xf32>
    %191 = math.tanh %190 : vector<8x32xf32>
    %192 = arith.mulf %188, %166 : vector<8x32xf32>
    %193 = arith.mulf %187, %191 : vector<8x32xf32>
    %194 = arith.addf %192, %193 : vector<8x32xf32>
    %195 = math.tanh %194 : vector<8x32xf32>
    %196 = arith.mulf %189, %195 : vector<8x32xf32>
    %197 = arith.truncf %196 : vector<8x32xf32> to vector<8x32xbf16>
    %198 = arith.index_cast %c6_i32 : i32 to index
    %c0_46 = arith.constant 0 : index
    %c0_47 = arith.constant 0 : index
    %199 = vector.load %arg4[%198, %c0_46, %c0_47] : memref<8x8x32xbf16, #tpu.memory_space<vmem>>, vector<1x8x32xbf16>
    %200 = vector.shape_cast %199 : vector<1x8x32xbf16> to vector<8x32xbf16>
    %201 = vector.shape_cast %197 : vector<8x32xbf16> to vector<1x8x32xbf16>
    tpu.vector_store %arg4[%198, %c0_46, %c0_47], %201 {strides = array<i32>} : memref<8x8x32xbf16, #tpu.memory_space<vmem>>, vector<1x8x32xbf16>,
    %c7_i32 = arith.constant 7 : i32
    %202 = arith.index_cast %c7_i32 : i32 to index
    %c0_48 = arith.constant 0 : index
    %c0_49 = arith.constant 0 : index
    %203 = vector.load %arg2[%202, %c0_48, %c0_49] : memref<8x8x128xbf16, #tpu.memory_space<vmem>>, vector<1x8x128xbf16>
    %204 = vector.shape_cast %203 : vector<1x8x128xbf16> to vector<8x128xbf16>
    %205 = arith.truncf %196 : vector<8x32xf32> to vector<8x32xbf16>
    %cst_50 = arith.constant dense<0.000000e+00> : vector<8x128xf32>
    %206 = tpu.matmul %205, %3, %cst_50 {dimension_numbers = #tpu.dot_dimension_numbers<[1], [0], [0], [1], [0, 0, 1, 1], [], []>} : vector<8x32xbf16>, vector<32x128xbf16>, vector<8x128xf32> -> vector<8x128xf32>
    %207 = arith.extf %204 : vector<8x128xbf16> to vector<8x128xf32>
    %208 = arith.addf %207, %206 : vector<8x128xf32>
    %209 = vector.extract_strided_slice %208 {offsets = [0, 0], sizes = [8, 96], strides = [1, 1]} : vector<8x128xf32> to vector<8x96xf32>
    %210 = arith.negf %209 : vector<8x96xf32>
    %211 = math.exp %210 : vector<8x96xf32>
    %cst_51 = arith.constant 1.000000e+00 : f32
    %212 = vector.broadcast %cst_51 : f32 to vector<8x96xf32>
    %213 = arith.addf %212, %211 : vector<8x96xf32>
    %214 = arith.divf %212, %213 : vector<8x96xf32>
    %215 = vector.extract_strided_slice %214 {offsets = [0, 0], sizes = [8, 32], strides = [1, 1]} : vector<8x96xf32> to vector<8x32xf32>
    %216 = vector.extract_strided_slice %214 {offsets = [0, 32], sizes = [8, 32], strides = [1, 1]} : vector<8x96xf32> to vector<8x32xf32>
    %217 = vector.extract_strided_slice %214 {offsets = [0, 64], sizes = [8, 32], strides = [1, 1]} : vector<8x96xf32> to vector<8x32xf32>
    %218 = vector.extract_strided_slice %208 {offsets = [0, 96], sizes = [8, 32], strides = [1, 1]} : vector<8x128xf32> to vector<8x32xf32>
    %219 = math.tanh %218 : vector<8x32xf32>
    %220 = arith.mulf %216, %194 : vector<8x32xf32>
    %221 = arith.mulf %215, %219 : vector<8x32xf32>
    %222 = arith.addf %220, %221 : vector<8x32xf32>
    %223 = math.tanh %222 : vector<8x32xf32>
    %224 = arith.mulf %217, %223 : vector<8x32xf32>
    %225 = arith.truncf %224 : vector<8x32xf32> to vector<8x32xbf16>
    %226 = arith.index_cast %c7_i32 : i32 to index
    %c0_52 = arith.constant 0 : index
    %c0_53 = arith.constant 0 : index
    %227 = vector.load %arg4[%226, %c0_52, %c0_53] : memref<8x8x32xbf16, #tpu.memory_space<vmem>>, vector<1x8x32xbf16>
    %228 = vector.shape_cast %227 : vector<1x8x32xbf16> to vector<8x32xbf16>
    %229 = vector.shape_cast %225 : vector<8x32xbf16> to vector<1x8x32xbf16>
    tpu.vector_store %arg4[%226, %c0_52, %c0_53], %229 {strides = array<i32>} : memref<8x8x32xbf16, #tpu.memory_space<vmem>>, vector<1x8x32xbf16>,
    %c8_i32 = arith.constant 8 : i32
    %c0_54 = arith.constant 0 : index
    %c0_55 = arith.constant 0 : index
    %230 = vector.load %arg5[%c0_54, %c0_55] : memref<8x32xf32, #tpu.memory_space<vmem>>, vector<8x32xf32>
    tpu.vector_store %arg5[%c0_54, %c0_55], %224 {strides = array<i32>} : memref<8x32xf32, #tpu.memory_space<vmem>>, vector<8x32xf32>,
    %c0_56 = arith.constant 0 : index
    %c0_57 = arith.constant 0 : index
    %231 = vector.load %arg6[%c0_56, %c0_57] : memref<8x32xf32, #tpu.memory_space<vmem>>, vector<8x32xf32>
    tpu.vector_store %arg6[%c0_56, %c0_57], %222 {strides = array<i32>} : memref<8x32xf32, #tpu.memory_space<vmem>>, vector<8x32xf32>,
    return
  }
  func.func @transform_0(%arg0: i32, %arg1: i32) -> (i32, i32, i32) {
    %c0_i32 = arith.constant 0 : i32
    %c0_i32_0 = arith.constant 0 : i32
    return %arg1, %arg0, %c0_i32 : i32, i32, i32
  }
  func.func @transform_1(%arg0: i32, %arg1: i32) -> (i32, i32) {
    %c0_i32 = arith.constant 0 : i32
    %c0_i32_0 = arith.constant 0 : i32
    %c0_i32_1 = arith.constant 0 : i32
    return %c0_i32, %c0_i32_0 : i32, i32
  }
  func.func @transform_2(%arg0: i32, %arg1: i32) -> (i32, i32, i32) {
    %c0_i32 = arith.constant 0 : i32
    %c0_i32_0 = arith.constant 0 : i32
    return %arg1, %arg0, %c0_i32 : i32, i32, i32
  }
}

</mosaic_0001>

<bundles_post_ra>
// kernel: decoder_rnn_forward.5
= control target key start
LH: loop header
LB: loop body
LE: loop exit
PB: predicated region body
PF: predicated region fallthrough
CT: control target
= control target key end

     0   :  { %8 = vsyncpa [#allocation3], 0  ;;  %s434_s0 = inlined_call_operand.hbm [shape: bf16[64,32], index: 0, kind: input, shape index: {}]   ;;  %s435_s1 = inlined_call_operand.hbm [shape: bf16[32,128], index: 1, kind: input, shape index: {}]   ;;  %s436_s2 = inlined_call_operand.hbm [shape: f32[1,128], index: 2, kind: input, shape index: {}]   ;;  %s437_s3 = inlined_call_operand.hbm [shape: f32[64,128], index: 3, kind: output, shape index: {}]  }
   0x1   :  { %9 = vsyncpa [#allocation6], 0 }
   0x2   :  { %10 = vsyncpa [#allocation4], 0  ;;  %s351_s12 = smov [#allocation5]   ;;  %s352_s14 = smov [#allocation2]  }
   0x3   :  { %s28_s13 = sshll.u32 %s351_s12, 4  ;;  %s16_s15 = sshll.u32 %s352_s14, 4  ;;  %s29_s13 = int_to_ptr.vmem [resolvable:$true] %s28_s13  ;;  %s379_s15 = int_to_ptr.vmem [resolvable:$true] %s16_s15 }
   0x4   :  { %s257_s18 = scalar_lea.hbm %s435_s1, 256 }
   0x5   :  { %p258_p0 = scmp.ne.s32.totalorder %s435_s1, %s257_s18  ;;  %p261_p1 = scmp.lt.u32.totalorder %s257_s18, %s435_s1 }
   0x7   :  { %p263_p2 = pnand %p261_p1, %p258_p0 }
   0x9   :  { %266 = shalt.err (!%p263_p2)
}
   0xa   :  { %s267_s23 = scalar_lea.vmem %s29_s13, 256  ;;  %p272_p4 = scmp.lt.s32.totalorder %s29_s13, %s29_s13 }
   0xb   :  { %p268_p3 = scmp.ne.s32.totalorder %s29_s13, %s267_s23  ;;  %p273_p5 = scmp.lt.s32.totalorder %s267_s23, %s267_s23 }
   0xd   :  { %p274_p6 = por %p273_p5, %p272_p4 }
   0xf   :  { %p275_p7 = pnand %p274_p6, %p268_p3 }
  0x11   :  { %278 = shalt.err (!%p275_p7)
}
  0x12   :  { %s353_s24 = smov 64   ;;  %s354_s25 = smov 4  }
  0x13   :  { %34 = dma.hbm_to_vmem [thread:$0]  %s435_s1, 256, %s29_s13, [#allocation6], %s353_s24, %s353_s24, %s354_s25  }
  0x14   :  { %s279_s30 = scalar_lea.hbm %s434_s0, 512 }
  0x15   :  { %p280_p8 = scmp.ne.s32.totalorder %s434_s0, %s279_s30  ;;  %p283_p9 = scmp.lt.u32.totalorder %s279_s30, %s434_s0 }
  0x17   :  { %p285_p10 = pnand %p283_p9, %p280_p8 }
  0x19   :  { %288 = shalt.err (!%p285_p10)
}
  0x1a   :  { %s289_s8 = scalar_lea.vmem %s379_s15, 512  ;;  %p294_p12 = scmp.lt.s32.totalorder %s379_s15, %s379_s15 }
  0x1b   :  { %p290_p11 = scmp.ne.s32.totalorder %s379_s15, %s289_s8  ;;  %p295_p13 = scmp.lt.s32.totalorder %s289_s8, %s289_s8 }
  0x1d   :  { %p296_p0 = por %p295_p13, %p294_p12 }
  0x1f   :  { %p297_p1 = pnand %p296_p0, %p290_p11 }
  0x21   :  { %300 = shalt.err (!%p297_p1)
}
  0x22   :  { %22 = dma.hbm_to_vmem [thread:$0]  %s434_s0, 512, %s379_s15, [#allocation3], %s353_s24, %s353_s24, %s354_s25  }
  0x23   :  { %s355_s10 = smov [#allocation7]   ;;  %s301_s14 = scalar_lea.hbm %s436_s2, 16 }
  0x24   :  { %s41_s11 = sshll.u32 %s355_s10, 4  ;;  %p302_p2 = scmp.ne.s32.totalorder %s436_s2, %s301_s14  ;;  %s42_s11 = int_to_ptr.vmem [resolvable:$true] %s41_s11 }
  0x25   :  { %p305_p3 = scmp.lt.u32.totalorder %s301_s14, %s436_s2 }
  0x27   :  { %p307_p4 = pnand %p305_p3, %p302_p2 }
  0x29   :  { %310 = shalt.err (!%p307_p4)
}
  0x2a   :  { %s311_s20 = scalar_lea.vmem %s42_s11, 16  ;;  %s315_s0 = scalar_lea.vmem %s42_s11, 32 }
  0x2b   :  { %p312_p5 = scmp.ne.s32.totalorder %s42_s11, %s311_s20  ;;  %p316_p6 = scmp.lt.s32.totalorder %s42_s11, %s42_s11 }
  0x2c   :  { %p317_p7 = scmp.lt.s32.totalorder %s315_s0, %s311_s20 }
  0x2e   :  { %p318_p8 = por %p317_p7, %p316_p6 }
  0x30   :  { %p319_p9 = pnand %p318_p8, %p312_p5 }
  0x32   :  { %322 = shalt.err (!%p319_p9)
}
  0x33   :  { %44 = dma.hbm_to_vmem [thread:$0]  %s436_s2, 16, %s42_s11, [#allocation6]  }
  0x34   :  { %345 = dma.done.wait [#allocation3], 512  }
  0x35   :  { %346 = vsyncadd [#allocation3], 4294966784 }
  0x36   :  { %347 = dma.done.wait [#allocation6], 272  }
  0x37   :  { %348 = vsyncadd [#allocation6], 4294967024  ;;  %v251_v0 = vld [vmem:[#allocation5] sm:$0xff]   ;;  %v252_v1 = vld [vmem:[#allocation5 + $0x8] sm:$0xff]   ;;  %vm106_vm0 = vcmask 261120   ;;  %s356_s2 = smov [#allocation8]  }
  0x38   :  { %227 = vmatprep.subr.bf16.mxu0 %v251_v0  ;;  %239 = vmatprep.subr.bf16.mxu1 %v251_v0  ;;  %v253_v2 = vld [vmem:[#allocation2] sm:$0xff]   ;;  %v254_v3 = vld [vmem:[#allocation2 + $0x10] sm:$0xff]   ;;  %v255_v4 = vld [vmem:[#allocation2 + $0x8] sm:$0xff]   ;;  %s197_s22 = sshll.u32 %s356_s2, 4  ;;  %s198_s22 = int_to_ptr.vmem [resolvable:$true] %s197_s22 }
  0x39   :  { %228 = vmatpush3.bf16.msra.mxu0 %v251_v0  ;;  %241 = vmatpush3.bf16.msra.mxu1 %v251_v0  ;;  %v256_v5 = vld [vmem:[#allocation2 + $0x18] sm:$0xff]   ;;  %v210_v6 = vld [vmem:[#allocation7] ss:$0 sm:$0xff]  ;;  %s323_s23 = scalar_lea.vmem %s198_s22, 1024  ;;  %p328_p11 = scmp.lt.s32.totalorder %s198_s22, %s198_s22 }
  0x3a   :  { %229 = vmatprep.subr.bf16.mxu0 %v252_v1  ;;  %240 = vmatprep.subr.bf16.mxu1 %v252_v1  ;;  %p324_p10 = scmp.ne.s32.totalorder %s198_s22, %s323_s23  ;;  %p329_p12 = scmp.lt.s32.totalorder %s323_s23, %s323_s23 }
  0x3b   :  { %231 = vmatprep.mubr.msk.bf16.mxu0 %vm106_vm0, %v253_v2  ;;  %235 = vmatprep.mubr.msk.bf16.mxu1 %vm106_vm0, %v254_v3 }
  0x3c   :  { %p330_p13 = por %p329_p12, %p328_p11 }
  0x3d   :  { %230 = vmatpush3.bf16.msra.mxu0 %v252_v1  ;;  %242 = vmatpush3.bf16.msra.mxu1 %v252_v1 }
  0x3e   :  { %p331_p0 = pnand %p330_p13, %p324_p10 }
  0x40   :  { %232 = vmatmul.mubr.msk.bf16.vlgmr.msra.gmra.mrb[0].mxu0 %vm106_vm0, %v255_v4  ;;  %236 = vmatmul.mubr.msk.bf16.vlgmr.msra.gmra.mrb[0].mxu1 %vm106_vm0, %v256_v5 }
 0x113   :  { %v233_v7 = vpop.f32.mrb[0].mxu0  ;;  %v237_v8 = vpop.f32.mrb[0].mxu1 }
 0x114   :  { %v162_v9 = vadd.f32 %v233_v7, %v210_v6  ;;  %v178_v10 = vadd.f32 %v237_v8, %v210_v6  ;;  %v153_v11 = vpop.f32.mrb[1].mxu0  ;;  %v169_v12 = vpop.f32.mrb[1].mxu1 }
 0x115   :  { %v154_v13 = vadd.f32 %v210_v6, %v153_v11  ;;  %v170_v14 = vadd.f32 %v210_v6, %v169_v12  ;;  %v234_v15 = vpop.f32.mrb[2].mxu0  ;;  %v238_v16 = vpop.f32.mrb[2].mxu1 }
 0x116   :  { %186 = vst [vmem:[#allocation8 + $0x10] sm:$0xff] %v162_v9  ;;  %190 = vst [vmem:[#allocation8 + $0x30] sm:$0xff] %v178_v10  ;;  %v165_v17 = vadd.f32 %v234_v15, %v210_v6  ;;  %v181_v18 = vadd.f32 %v238_v16, %v210_v6  ;;  %v156_v19 = vpop.f32.mrb[3].mxu0  ;;  %v172_v20 = vpop.f32.mrb[3].mxu1 }
 0x117   :  { %184 = vst [vmem:[#allocation8] sm:$0xff] %v154_v13  ;;  %188 = vst [vmem:[#allocation8 + $0x20] sm:$0xff] %v170_v14  ;;  %v157_v21 = vadd.f32 %v210_v6, %v156_v19  ;;  %v173_v22 = vadd.f32 %v210_v6, %v172_v20 }
 0x118   :  { %187 = vst [vmem:[#allocation8 + $0x18] sm:$0xff] %v165_v17  ;;  %191 = vst [vmem:[#allocation8 + $0x38] sm:$0xff] %v181_v18 }
 0x119   :  { %185 = vst [vmem:[#allocation8 + $0x8] sm:$0xff] %v157_v21  ;;  %189 = vst [vmem:[#allocation8 + $0x28] sm:$0xff] %v173_v22 }
 0x11a   :  { %334 = shalt.err (!%p331_p0)
}
 0x11b   :  { %s335_s26 = scalar_lea.hbm %s437_s3, 1024 }
 0x11c   :  { %p336_p1 = scmp.ne.s32.totalorder %s437_s3, %s335_s26  ;;  %p339_p2 = scmp.lt.u32.totalorder %s335_s26, %s437_s3 }
 0x11e   :  { %p341_p3 = pnand %p339_p2, %p336_p1 }
 0x120   :  { %344 = shalt.err (!%p341_p3)
}
 0x121   :  { %s357_s4 = smov 128   ;;  %s358_s5 = smov 8  }
 0x122   :  { %203 = dma.vmem_to_hbm [thread:$0]  %s198_s22, 1024, %s437_s3, [#allocation4], %s357_s4, %s357_s4, %s358_s5  }
 0x123   :  { %349 = dma.done.wait [#allocation4], 1024  }
 0x124   :  { %350 = vsyncadd [#allocation4], 4294966272 }
 0x125   :  { %207 = vsyncpa [#allocation3], 1 }
 0x126   :  { %208 = vsyncpa [#allocation6], 1 }
 0x127   :  { %209 = vsyncpa [#allocation4], 1 }

// kernel: decoder_rnn_forward.3
= control target key start
LH: loop header
LB: loop body
LE: loop exit
PB: predicated region body
PF: predicated region fallthrough
CT: control target
= control target key end

     0   :  { %8 = vsyncpa [#allocation3], 0  ;;  %s510_s0 = inlined_call_operand.hbm [shape: bf16[64,32], index: 0, kind: input, shape index: {}]   ;;  %s511_s1 = inlined_call_operand.hbm [shape: bf16[32,128], index: 1, kind: input, shape index: {}]   ;;  %s512_s2 = inlined_call_operand.hbm [shape: f32[1,128], index: 2, kind: input, shape index: {}]   ;;  %s513_s3 = inlined_call_operand.hbm [shape: bf16[64,128], index: 3, kind: output, shape index: {}]  }
   0x1   :  { %9 = vsyncpa [#allocation6], 0 }
   0x2   :  { %10 = vsyncpa [#allocation4], 0  ;;  %s420_s12 = smov [#allocation5]   ;;  %s421_s14 = smov [#allocation2]  }
   0x3   :  { %s28_s13 = sshll.u32 %s420_s12, 4  ;;  %s16_s15 = sshll.u32 %s421_s14, 4  ;;  %s29_s13 = int_to_ptr.vmem [resolvable:$true] %s28_s13  ;;  %s446_s15 = int_to_ptr.vmem [resolvable:$true] %s16_s15 }
   0x4   :  { %s326_s18 = scalar_lea.hbm %s511_s1, 256 }
   0x5   :  { %p327_p0 = scmp.ne.s32.totalorder %s511_s1, %s326_s18  ;;  %p330_p1 = scmp.lt.u32.totalorder %s326_s18, %s511_s1 }
   0x7   :  { %p332_p2 = pnand %p330_p1, %p327_p0 }
   0x9   :  { %335 = shalt.err (!%p332_p2)
}
   0xa   :  { %s336_s23 = scalar_lea.vmem %s29_s13, 256  ;;  %p341_p4 = scmp.lt.s32.totalorder %s29_s13, %s29_s13 }
   0xb   :  { %p337_p3 = scmp.ne.s32.totalorder %s29_s13, %s336_s23  ;;  %p342_p5 = scmp.lt.s32.totalorder %s336_s23, %s336_s23 }
   0xd   :  { %p343_p6 = por %p342_p5, %p341_p4 }
   0xf   :  { %p344_p7 = pnand %p343_p6, %p337_p3 }
  0x11   :  { %347 = shalt.err (!%p344_p7)
}
  0x12   :  { %s422_s24 = smov 64   ;;  %s423_s25 = smov 4  }
  0x13   :  { %34 = dma.hbm_to_vmem [thread:$0]  %s511_s1, 256, %s29_s13, [#allocation6], %s422_s24, %s422_s24, %s423_s25  }
  0x14   :  { %s348_s30 = scalar_lea.hbm %s510_s0, 512 }
  0x15   :  { %p349_p8 = scmp.ne.s32.totalorder %s510_s0, %s348_s30  ;;  %p352_p9 = scmp.lt.u32.totalorder %s348_s30, %s510_s0 }
  0x17   :  { %p354_p10 = pnand %p352_p9, %p349_p8 }
  0x19   :  { %357 = shalt.err (!%p354_p10)
}
  0x1a   :  { %s358_s8 = scalar_lea.vmem %s446_s15, 512  ;;  %p363_p12 = scmp.lt.s32.totalorder %s446_s15, %s446_s15 }
  0x1b   :  { %p359_p11 = scmp.ne.s32.totalorder %s446_s15, %s358_s8  ;;  %p364_p13 = scmp.lt.s32.totalorder %s358_s8, %s358_s8 }
  0x1d   :  { %p365_p0 = por %p364_p13, %p363_p12 }
  0x1f   :  { %p366_p1 = pnand %p365_p0, %p359_p11 }
  0x21   :  { %369 = shalt.err (!%p366_p1)
}
  0x22   :  { %22 = dma.hbm_to_vmem [thread:$0]  %s510_s0, 512, %s446_s15, [#allocation3], %s422_s24, %s422_s24, %s423_s25  }
  0x23   :  { %s424_s10 = smov [#allocation7]   ;;  %s370_s14 = scalar_lea.hbm %s512_s2, 16 }
  0x24   :  { %s41_s11 = sshll.u32 %s424_s10, 4  ;;  %p371_p2 = scmp.ne.s32.totalorder %s512_s2, %s370_s14  ;;  %s42_s11 = int_to_ptr.vmem [resolvable:$true] %s41_s11 }
  0x25   :  { %p374_p3 = scmp.lt.u32.totalorder %s370_s14, %s512_s2 }
  0x27   :  { %p376_p4 = pnand %p374_p3, %p371_p2 }
  0x29   :  { %379 = shalt.err (!%p376_p4)
}
  0x2a   :  { %s380_s20 = scalar_lea.vmem %s42_s11, 16  ;;  %s384_s0 = scalar_lea.vmem %s42_s11, 32 }
  0x2b   :  { %p381_p5 = scmp.ne.s32.totalorder %s42_s11, %s380_s20  ;;  %p385_p6 = scmp.lt.s32.totalorder %s42_s11, %s42_s11 }
  0x2c   :  { %p386_p7 = scmp.lt.s32.totalorder %s384_s0, %s380_s20 }
  0x2e   :  { %p387_p8 = por %p386_p7, %p385_p6 }
  0x30   :  { %p388_p9 = pnand %p387_p8, %p381_p5 }
  0x32   :  { %391 = shalt.err (!%p388_p9)
}
  0x33   :  { %44 = dma.hbm_to_vmem [thread:$0]  %s512_s2, 16, %s42_s11, [#allocation6]  }
  0x34   :  { %414 = dma.done.wait [#allocation3], 512  }
  0x35   :  { %415 = vsyncadd [#allocation3], 4294966784 }
  0x36   :  { %416 = dma.done.wait [#allocation6], 272  }
  0x37   :  { %417 = vsyncadd [#allocation6], 4294967024  ;;  %v320_v0 = vld [vmem:[#allocation5] sm:$0xff]   ;;  %v321_v1 = vld [vmem:[#allocation5 + $0x8] sm:$0xff]   ;;  %vm106_vm0 = vcmask 261120   ;;  %s425_s2 = smov [#allocation8]  }
  0x38   :  { %298 = vmatprep.subr.bf16.mxu0 %v320_v0  ;;  %310 = vmatprep.subr.bf16.mxu1 %v320_v0  ;;  %v322_v2 = vld [vmem:[#allocation2] sm:$0xff]   ;;  %v323_v3 = vld [vmem:[#allocation2 + $0x10] sm:$0xff]   ;;  %v324_v4 = vld [vmem:[#allocation2 + $0x8] sm:$0xff]   ;;  %s229_s22 = sshll.u32 %s425_s2, 4  ;;  %s230_s22 = int_to_ptr.vmem [resolvable:$true] %s229_s22 }
  0x39   :  { %299 = vmatpush3.bf16.msra.mxu0 %v320_v0  ;;  %312 = vmatpush3.bf16.msra.mxu1 %v320_v0  ;;  %v325_v5 = vld [vmem:[#allocation2 + $0x18] sm:$0xff]   ;;  %v242_v7 = vld [vmem:[#allocation7] ss:$0 sm:$0xff]  ;;  %s392_s23 = scalar_lea.vmem %s230_s22, 512  ;;  %p397_p11 = scmp.lt.s32.totalorder %s230_s22, %s230_s22 }
  0x3a   :  { %300 = vmatprep.subr.bf16.mxu0 %v321_v1  ;;  %311 = vmatprep.subr.bf16.mxu1 %v321_v1  ;;  %p393_p10 = scmp.ne.s32.totalorder %s230_s22, %s392_s23  ;;  %p398_p12 = scmp.lt.s32.totalorder %s392_s23, %s392_s23 }
  0x3b   :  { %302 = vmatprep.mubr.msk.bf16.mxu0 %vm106_vm0, %v322_v2  ;;  %306 = vmatprep.mubr.msk.bf16.mxu1 %vm106_vm0, %v323_v3 }
  0x3c   :  { %p399_p13 = por %p398_p12, %p397_p11 }
  0x3d   :  { %301 = vmatpush3.bf16.msra.mxu0 %v321_v1  ;;  %313 = vmatpush3.bf16.msra.mxu1 %v321_v1 }
  0x3e   :  { %p400_p0 = pnand %p399_p13, %p393_p10 }
  0x40   :  { %303 = vmatmul.mubr.msk.bf16.vlgmr.msra.gmra.mrb[0].mxu0 %vm106_vm0, %v324_v4  ;;  %307 = vmatmul.mubr.msk.bf16.vlgmr.msra.gmra.mrb[0].mxu1 %vm106_vm0, %v325_v5 }
 0x113   :  { %v304_v6 = vpop.f32.mrb[0].mxu0  ;;  %v308_v8 = vpop.f32.mrb[0].mxu1 }
 0x114   :  { %v153_v9 = vpop.f32.mrb[1].mxu0  ;;  %v169_v10 = vpop.f32.mrb[1].mxu1  ;;  %v162_v13 = vadd.f32 %v304_v6, %v242_v7  ;;  %v178_v14 = vadd.f32 %v308_v8, %v242_v7 }
 0x115   :  { %v305_v11 = vpop.f32.mrb[2].mxu0  ;;  %v309_v12 = vpop.f32.mrb[2].mxu1  ;;  %v154_v19 = vadd.f32 %v242_v7, %v153_v9  ;;  %v170_v20 = vadd.f32 %v242_v7, %v169_v10 }
 0x116   :  { %v165_v15 = vadd.f32 %v305_v11, %v242_v7  ;;  %v181_v16 = vadd.f32 %v309_v12, %v242_v7  ;;  %v156_v17 = vpop.f32.mrb[3].mxu0  ;;  %v172_v18 = vpop.f32.mrb[3].mxu1 }
 0x117   :  { %v157_v21 = vadd.f32 %v242_v7, %v156_v17  ;;  %v173_v22 = vadd.f32 %v242_v7, %v172_v18 }
 0x118   :  { %v277_v23 = vpack.c.bf16 %v165_v15, %v162_v13  ;;  %v287_v24 = vpack.c.bf16 %v181_v16, %v178_v14 }
 0x119   :  { %v272_v25 = vpack.c.bf16 %v157_v21, %v154_v19  ;;  %v282_v26 = vpack.c.bf16 %v173_v22, %v170_v20 }
 0x11a   :  { %289 = vst [vmem:[#allocation8 + $0x8] sm:$0xff] %v277_v23   ;;  %291 = vst [vmem:[#allocation8 + $0x18] sm:$0xff] %v287_v24  }
 0x11b   :  { %273 = vst [vmem:[#allocation8] sm:$0xff] %v272_v25   ;;  %290 = vst [vmem:[#allocation8 + $0x10] sm:$0xff] %v282_v26  }
 0x11c   :  { %403 = shalt.err (!%p400_p0)
}
 0x11d   :  { %s404_s28 = scalar_lea.hbm %s513_s3, 512 }
 0x11e   :  { %p405_p1 = scmp.ne.s32.totalorder %s513_s3, %s404_s28  ;;  %p408_p2 = scmp.lt.u32.totalorder %s404_s28, %s513_s3 }
 0x120   :  { %p410_p3 = pnand %p408_p2, %p405_p1 }
 0x122   :  { %413 = shalt.err (!%p410_p3)
}
 0x123   :  { %235 = dma.vmem_to_hbm [thread:$0]  %s230_s22, 512, %s513_s3, [#allocation4], %s422_s24, %s422_s24, %s423_s25  }
 0x124   :  { %418 = dma.done.wait [#allocation4], 512  }
 0x125   :  { %419 = vsyncadd [#allocation4], 4294966784 }
 0x126   :  { %239 = vsyncpa [#allocation3], 1 }
 0x127   :  { %240 = vsyncpa [#allocation6], 1 }
 0x128   :  { %241 = vsyncpa [#allocation4], 1 }

// kernel: decoder_rnn_forward.4
= control target key start
LH: loop header
LB: loop body
LE: loop exit
PB: predicated region body
PF: predicated region fallthrough
CT: control target
= control target key end

     0   :  { %7 = vsyncpa [#allocation5], 0  ;;  %s1230_s0 = inlined_call_operand.hbm [shape: bf16[8,8,128], index: 0, kind: input, shape index: {}]   ;;  %s1231_s1 = inlined_call_operand.hbm [shape: bf16[32,128], index: 1, kind: input, shape index: {}]   ;;  %s1232_s2 = inlined_call_operand.hbm [shape: bf16[8,8,32], index: 2, kind: output, shape index: {}]  }
   0x1   :  { %8 = vsyncpa [#allocation8], 0 }
   0x2   :  { %9 = vsyncpa [#allocation6], 0  ;;  %s1022_s9 = smov [#allocation4]   ;;  %s950_s13 = scalar_lea.hbm %s1230_s0, 512 }
   0x3   :  { %s15_s10 = sshll.u32 %s1022_s9, 4  ;;  %p951_p0 = scmp.ne.s32.totalorder %s1230_s0, %s950_s13  ;;  %s16_s10 = int_to_ptr.vmem [resolvable:$true] %s15_s10 }
   0x4   :  { %p954_p1 = scmp.lt.u32.totalorder %s950_s13, %s1230_s0 }
   0x6   :  { %p956_p2 = pnand %p954_p1, %p951_p0 }
   0x8   :  { %959 = shalt.err (!%p956_p2)
}
   0x9   :  { %s960_s18 = scalar_lea.vmem %s16_s10, 512  ;;  %p965_p4 = scmp.lt.s32.totalorder %s16_s10, %s16_s10 }
   0xa   :  { %p961_p3 = scmp.ne.s32.totalorder %s16_s10, %s960_s18  ;;  %p966_p5 = scmp.lt.s32.totalorder %s960_s18, %s960_s18 }
   0xc   :  { %p967_p6 = por %p966_p5, %p965_p4 }
   0xe   :  { %p968_p7 = pnand %p967_p6, %p961_p3 }
  0x10   :  { %971 = shalt.err (!%p968_p7)
}
  0x11   :  { %s1023_s19 = smov 64   ;;  %s1024_s20 = smov 4  }
  0x12   :  { %21 = dma.hbm_to_vmem [thread:$0]  %s1230_s0, 512, %s16_s10, [#allocation5], %s1023_s19, %s1023_s19, %s1024_s20  }
  0x13   :  { %s1025_s23 = smov [#allocation7]   ;;  %s972_s27 = scalar_lea.hbm %s1231_s1, 256 }
  0x14   :  { %s27_s24 = sshll.u32 %s1025_s23, 4  ;;  %p973_p8 = scmp.ne.s32.totalorder %s1231_s1, %s972_s27  ;;  %s28_s24 = int_to_ptr.vmem [resolvable:$true] %s27_s24 }
  0x15   :  { %p976_p9 = scmp.lt.u32.totalorder %s972_s27, %s1231_s1 }
  0x17   :  { %p978_p10 = pnand %p976_p9, %p973_p8 }
  0x19   :  { %981 = shalt.err (!%p978_p10)
}
  0x1a   :  { %s982_s4 = scalar_lea.vmem %s28_s24, 256  ;;  %p987_p12 = scmp.lt.s32.totalorder %s28_s24, %s28_s24 }
  0x1b   :  { %p983_p11 = scmp.ne.s32.totalorder %s28_s24, %s982_s4  ;;  %p988_p13 = scmp.lt.s32.totalorder %s982_s4, %s982_s4 }
  0x1d   :  { %p989_p0 = por %p988_p13, %p987_p12 }
  0x1f   :  { %p990_p1 = pnand %p989_p0, %p983_p11 }
  0x21   :  { %993 = shalt.err (!%p990_p1)
}
  0x22   :  { %33 = dma.hbm_to_vmem [thread:$0]  %s1231_s1, 256, %s28_s24, [#allocation8], %s1023_s19, %s1023_s19, %s1024_s20  }
  0x23   :  { %1016 = dma.done.wait [#allocation5], 512  }
  0x24   :  { %1017 = vsyncadd [#allocation5], 4294966784 }
  0x25   :  { %1018 = dma.done.wait [#allocation8], 256  }
  0x26   :  { %1019 = vsyncadd [#allocation8], 4294967040  ;;  %vm45_vm0 = vcmask 261120   ;;  %v1026_v0 = vmov 0.0   ;;  %vm1027_vm1 = vmmov 0   ;;  %v1086_v1 = vld [vmem:[#allocation7] sm:$0xff]  }
  0x27   :  { %811 = vmatprep.subr.bf16.mxu0 %v1026_v0  ;;  %815 = vmatprep.mubr.msk.bf16.mxu0 %vm1027_vm1, %v1026_v0  ;;  %46 = vst.msk [vmem:[#allocation2] sm:$0xff] %vm45_vm0, %v1026_v0  ;;  %47 = vst.msk [vmem:[#allocation3] sm:$0xff] %vm45_vm0, %v1026_v0  ;;  %v1089_v2 = vld [vmem:[#allocation7 + $0x8] sm:$0xff]   ;;  %v54_v5 = vld [vmem:[#allocation4] sm:$0xff]   ;;  %s1028_s1 = smov 32   ;;  %vm149_vm2 = vcmask 257024  }
  0x28   :  { %819 = vmatprep.subr.bf16.mxu1 %v1026_v0  ;;  %823 = vmatprep.mubr.msk.bf16.mxu1 %vm1027_vm1, %v1026_v0  ;;  %v112_v6 = vunpack.c.l.bf16 %v54_v5  ;;  %v198_v29 = vunpack.c.h.bf16 %v54_v5  ;;  %v234_v50 = vld [vmem:[#allocation4 + $0x8] sm:$0xff]   ;;  %s1029_s6 = smov 96   ;;  %s1030_s7 = smov [#allocation9]  }
  0x29   :  { %812 = vmatpush3.bf16.msra.mxu0 %v1086_v1  ;;  %820 = vmatpush3.bf16.msra.mxu1 %v1086_v1  ;;  %v280_v51 = vunpack.c.l.bf16 %v234_v50  ;;  %s740_s8 = sshll.u32 %s1030_s7, 4  ;;  %s741_s8 = int_to_ptr.vmem [resolvable:$true] %s740_s8 }
  0x2a   :  { %813 = vmatprep.subr.bf16.mxu0 %v1026_v0  ;;  %821 = vmatprep.subr.bf16.mxu1 %v1026_v0  ;;  %s994_s9 = scalar_lea.vmem %s741_s8, 512  ;;  %p999_p3 = scmp.lt.s32.totalorder %s741_s8, %s741_s8 }
  0x2b   :  { %p995_p2 = scmp.ne.s32.totalorder %s741_s8, %s994_s9  ;;  %p1000_p4 = scmp.lt.s32.totalorder %s994_s9, %s994_s9 }
  0x2d   :  { %814 = vmatpush3.bf16.msra.mxu0 %v1089_v2  ;;  %822 = vmatpush3.bf16.msra.mxu1 %v1089_v2  ;;  %p1001_p5 = por %p1000_p4, %p999_p3 }
  0x2e   :  { %v52_v3 = vld [vmem:[#allocation2] sm:$0xff]  ;;  %827 = vmatprep.subr.bf16.mxu0 %v1026_v0  ;;  %835 = vmatprep.subr.bf16.mxu1 %v1026_v0  ;;  %v53_v13 = vld [vmem:[#allocation3] sm:$0xff] }
  0x2f   :  { %v55_v4 = vpack.c.bf16 %v52_v3, %v52_v3  ;;  %p1002_p6 = pnand %p1001_p5, %p995_p2 }
  0x31   :  { %816 = vmatmul.mubr.msk.bf16.vlgmr.msra.gmra.mrb[0].mxu0 %vm45_vm0, %v55_v4 }
  0x32   :  { %828 = vmatpush3.bf16.msra.mxu0 %v1086_v1  ;;  %831 = vmatprep.mubr.msk.bf16.mxu0 %vm1027_vm1, %v1026_v0 }
  0x33   :  { %829 = vmatprep.subr.bf16.mxu0 %v1026_v0 }
  0x36   :  { %830 = vmatpush3.bf16.msra.mxu0 %v1089_v2 }
  0x37   :  { %843 = vmatprep.subr.bf16.mxu0 %v1026_v0 }
 0x104   :  { %v106_v7 = vpop.f32.mrb[0].mxu0 }
 0x105   :  { %v113_v8 = vadd.f32 %v112_v6, %v106_v7  ;;  %v817_v9 = vpop.f32.mrb[1].mxu0 }
 0x106   :  { %v109_v10 = vpop.f32.mrb[2].mxu0 }
 0x107   :  { %886 = vtanh.f32 %v113_v8  ;;  %v818_v11 = vpop.f32.mrb[3].mxu0  ;;  %v756_v14 = vmul.f32 -1.442695, %v113_v8 }
 0x108   :  { %v362_v11 = vunpack.c.h.bf16 %v234_v50 }
 0x109   :  { %888 = vpow2.f32 %v756_v14 }
 0x111   :  { %v887_v12 = vpop.eup %886 }
 0x112   :  { %127 = vrot.lane.b32.xlu0 %v887_v12, %s1028_s1 }
 0x113   :  { %v889_v15 = vpop.eup %888 }
 0x114   :  { %v117_v16 = vadd.f32 1.0, %v889_v15 }
 0x116   :  { %122 = vrot.lane.b32.xlu0 %v53_v13, %s1028_s1  ;;  %890 = vrcp.f32 %v117_v16 }
 0x120   :  { %v891_v17 = vpop.eup %890 }
 0x184   :  { %v128_v18 = vpop.permute.xlu0 %127 }
 0x185   :  { %v130_v19 = vmul.f32 %v891_v17, %v128_v18 }
 0x187   :  { %132 = vrot.lane.b32.xlu1 %v130_v19, %s1028_s1 }
 0x188   :  { %v123_v20 = vpop.permute.xlu0 %122 }
 0x189   :  { %v125_v21 = vmul.f32 %v891_v17, %v123_v20 }
 0x1f9   :  { %v133_v22 = vpop.permute.xlu1 %132 }
 0x1fa   :  { %v135_v23 = vadd.f32 %v133_v22, %v125_v21 }
 0x1fc   :  { %892 = vtanh.f32 %v135_v23 }
 0x206   :  { %v893_v24 = vpop.eup %892 }
 0x207   :  { %138 = vrot.lane.b32.xlu1 %v893_v24, %s1028_s1 }
 0x279   :  { %v139_v25 = vpop.permute.xlu1 %138 }
 0x27a   :  { %v141_v26 = vmul.f32 %v891_v17, %v139_v25 }
 0x27c   :  { %v1109_v27 = vpack.c.bf16 %v141_v26, %v141_v26 }
 0x27e   :  { %153 = vrot.lane.b32.xlu0 %v1109_v27, %s1023_s19 }
 0x2f0   :  { %v154_v28 = vpop.permute.xlu0 %153 }
 0x2f1   :  { %824 = vmatmul.mubr.msk.bf16.vlgmr.msra.gmra.mrb[0].mxu1 %vm45_vm0, %v154_v28 }
 0x2f2   :  { %836 = vmatpush3.bf16.msra.mxu1 %v1086_v1  ;;  %839 = vmatprep.mubr.msk.bf16.mxu1 %vm1027_vm1, %v1026_v0 }
 0x2f3   :  { %837 = vmatprep.subr.bf16.mxu1 %v1026_v0 }
 0x2f6   :  { %838 = vmatpush3.bf16.msra.mxu1 %v1089_v2 }
 0x2f7   :  { %851 = vmatprep.subr.bf16.mxu1 %v1026_v0 }
 0x3c4   :  { %v192_v30 = vpop.f32.mrb[0].mxu1 }
 0x3c5   :  { %v199_v31 = vadd.f32 %v198_v29, %v192_v30  ;;  %v825_v32 = vpop.f32.mrb[1].mxu1 }
 0x3c6   :  { %v195_v33 = vpop.f32.mrb[2].mxu1 }
 0x3c7   :  { %894 = vtanh.f32 %v199_v31  ;;  %v826_v34 = vpop.f32.mrb[3].mxu1  ;;  %v759_v36 = vmul.f32 -1.442695, %v199_v31  ;;  %v398_v33 = vld [vmem:[#allocation4 + $0x10] sm:$0xff]  }
 0x3c8   :  { %v444_v34 = vunpack.c.l.bf16 %v398_v33 }
 0x3c9   :  { %896 = vpow2.f32 %v759_v36 }
 0x3d1   :  { %v895_v35 = vpop.eup %894 }
 0x3d2   :  { %209 = vrot.lane.b32.xlu1 %v895_v35, %s1028_s1 }
 0x3d3   :  { %v897_v37 = vpop.eup %896 }
 0x3d4   :  { %v203_v38 = vadd.f32 1.0, %v897_v37 }
 0x3d6   :  { %898 = vrcp.f32 %v203_v38 }
 0x3e0   :  { %v899_v39 = vpop.eup %898 }
 0x3e1   :  { %v207_v42 = vmul.f32 %v899_v39, %v135_v23 }
 0x444   :  { %v210_v40 = vpop.permute.xlu1 %209 }
 0x445   :  { %v212_v41 = vmul.f32 %v899_v39, %v210_v40 }
 0x447   :  { %214 = vrot.lane.b32.xlu0 %v212_v41, %s1028_s1 }
 0x4b9   :  { %v215_v43 = vpop.permute.xlu0 %214 }
 0x4ba   :  { %v217_v44 = vadd.f32 %v215_v43, %v207_v42 }
 0x4bc   :  { %900 = vtanh.f32 %v217_v44 }
 0x4c6   :  { %v901_v45 = vpop.eup %900 }
 0x4c7   :  { %220 = vrot.lane.b32.xlu1 %v901_v45, %s1028_s1 }
 0x539   :  { %v221_v46 = vpop.permute.xlu1 %220 }
 0x53a   :  { %v223_v47 = vmul.f32 %v899_v39, %v221_v46 }
 0x53c   :  { %v1123_v48 = vpack.c.bf16 %v223_v47, %v223_v47 }
 0x53e   :  { %235 = vrot.lane.b32.xlu0 %v1123_v48, %s1023_s19 }
 0x5b0   :  { %v236_v49 = vpop.permute.xlu0 %235 }
 0x5b1   :  { %832 = vmatmul.mubr.msk.bf16.vlgmr.msra.gmra.mrb[4].mxu0 %vm45_vm0, %v236_v49 }
 0x5b2   :  { %844 = vmatpush3.bf16.msra.mxu0 %v1086_v1  ;;  %847 = vmatprep.mubr.msk.bf16.mxu0 %vm1027_vm1, %v1026_v0 }
 0x5b3   :  { %845 = vmatprep.subr.bf16.mxu0 %v1026_v0 }
 0x5b6   :  { %846 = vmatpush3.bf16.msra.mxu0 %v1089_v2 }
 0x5b7   :  { %859 = vmatprep.subr.bf16.mxu0 %v1026_v0 }
 0x684   :  { %v274_v52 = vpop.f32.mrb[4].mxu0 }
 0x685   :  { %v281_v53 = vadd.f32 %v280_v51, %v274_v52  ;;  %v833_v54 = vpop.f32.mrb[5].mxu0 }
 0x686   :  { %v277_v55 = vpop.f32.mrb[6].mxu0 }
 0x687   :  { %902 = vtanh.f32 %v281_v53  ;;  %v834_v56 = vpop.f32.mrb[7].mxu0  ;;  %v762_v58 = vmul.f32 -1.442695, %v281_v53 }
 0x688   :  { %v526_v56 = vunpack.c.h.bf16 %v398_v33 }
 0x689   :  { %904 = vpow2.f32 %v762_v58 }
 0x691   :  { %v903_v57 = vpop.eup %902 }
 0x692   :  { %291 = vrot.lane.b32.xlu1 %v903_v57, %s1028_s1 }
 0x693   :  { %v905_v59 = vpop.eup %904 }
 0x694   :  { %v285_v60 = vadd.f32 1.0, %v905_v59 }
 0x696   :  { %906 = vrcp.f32 %v285_v60 }
 0x6a0   :  { %v907_v61 = vpop.eup %906 }
 0x6a1   :  { %v289_v3 = vmul.f32 %v907_v61, %v217_v44 }
 0x704   :  { %v292_v62 = vpop.permute.xlu1 %291 }
 0x705   :  { %v294_v63 = vmul.f32 %v907_v61, %v292_v62 }
 0x707   :  { %296 = vrot.lane.b32.xlu0 %v294_v63, %s1028_s1 }
 0x779   :  { %v297_v4 = vpop.permute.xlu0 %296 }
 0x77a   :  { %v299_v5 = vadd.f32 %v297_v4, %v289_v3 }
 0x77c   :  { %908 = vtanh.f32 %v299_v5 }
 0x786   :  { %v909_v6 = vpop.eup %908 }
 0x787   :  { %302 = vrot.lane.b32.xlu1 %v909_v6, %s1028_s1 }
 0x7f9   :  { %v303_v7 = vpop.permute.xlu1 %302 }
 0x7fa   :  { %v305_v8 = vmul.f32 %v907_v61, %v303_v7 }
 0x7fc   :  { %v1137_v9 = vpack.c.bf16 %v305_v8, %v305_v8 }
 0x7fe   :  { %317 = vrot.lane.b32.xlu0 %v1137_v9, %s1023_s19 }
 0x870   :  { %v318_v10 = vpop.permute.xlu0 %317 }
 0x871   :  { %840 = vmatmul.mubr.msk.bf16.vlgmr.msra.gmra.mrb[4].mxu1 %vm45_vm0, %v318_v10 }
 0x872   :  { %852 = vmatpush3.bf16.msra.mxu1 %v1086_v1  ;;  %855 = vmatprep.mubr.msk.bf16.mxu1 %vm1027_vm1, %v1026_v0 }
 0x873   :  { %853 = vmatprep.subr.bf16.mxu1 %v1026_v0 }
 0x876   :  { %854 = vmatpush3.bf16.msra.mxu1 %v1089_v2 }
 0x877   :  { %867 = vmatprep.subr.bf16.mxu1 %v1026_v0 }
 0x944   :  { %v356_v12 = vpop.f32.mrb[4].mxu1 }
 0x945   :  { %v363_v13 = vadd.f32 %v362_v11, %v356_v12  ;;  %v841_v14 = vpop.f32.mrb[5].mxu1 }
 0x946   :  { %v359_v15 = vpop.f32.mrb[6].mxu1  ;;  %v562_v14 = vld [vmem:[#allocation4 + $0x18] sm:$0xff]  }
 0x947   :  { %910 = vtanh.f32 %v363_v13  ;;  %v842_v16 = vpop.f32.mrb[7].mxu1  ;;  %v765_v18 = vmul.f32 -1.442695, %v363_v13  ;;  %v608_v15 = vunpack.c.l.bf16 %v562_v14 }
 0x949   :  { %912 = vpow2.f32 %v765_v18 }
 0x951   :  { %v911_v17 = vpop.eup %910 }
 0x952   :  { %373 = vrot.lane.b32.xlu1 %v911_v17, %s1028_s1 }
 0x953   :  { %v913_v19 = vpop.eup %912 }
 0x954   :  { %v367_v20 = vadd.f32 1.0, %v913_v19 }
 0x956   :  { %914 = vrcp.f32 %v367_v20 }
 0x960   :  { %v915_v21 = vpop.eup %914 }
 0x961   :  { %v371_v24 = vmul.f32 %v915_v21, %v299_v5 }
 0x9c4   :  { %v374_v22 = vpop.permute.xlu1 %373 }
 0x9c5   :  { %v376_v23 = vmul.f32 %v915_v21, %v374_v22 }
 0x9c7   :  { %378 = vrot.lane.b32.xlu0 %v376_v23, %s1028_s1 }
 0xa39   :  { %v379_v25 = vpop.permute.xlu0 %378 }
 0xa3a   :  { %v381_v26 = vadd.f32 %v379_v25, %v371_v24 }
 0xa3c   :  { %916 = vtanh.f32 %v381_v26 }
 0xa46   :  { %v917_v28 = vpop.eup %916 }
 0xa47   :  { %384 = vrot.lane.b32.xlu1 %v917_v28, %s1028_s1 }
 0xab9   :  { %v385_v29 = vpop.permute.xlu1 %384 }
 0xaba   :  { %v387_v30 = vmul.f32 %v915_v21, %v385_v29 }
 0xabc   :  { %v1151_v31 = vpack.c.bf16 %v387_v30, %v387_v30 }
 0xabe   :  { %399 = vrot.lane.b32.xlu0 %v1151_v31, %s1023_s19 }
 0xb30   :  { %v400_v32 = vpop.permute.xlu0 %399 }
 0xb31   :  { %848 = vmatmul.mubr.msk.bf16.vlgmr.msra.gmra.mrb[8].mxu0 %vm45_vm0, %v400_v32 }
 0xb32   :  { %860 = vmatpush3.bf16.msra.mxu0 %v1086_v1  ;;  %863 = vmatprep.mubr.msk.bf16.mxu0 %vm1027_vm1, %v1026_v0 }
 0xb33   :  { %861 = vmatprep.subr.bf16.mxu0 %v1026_v0 }
 0xb36   :  { %862 = vmatpush3.bf16.msra.mxu0 %v1089_v2 }
 0xc04   :  { %v438_v35 = vpop.f32.mrb[8].mxu0 }
 0xc05   :  { %v445_v36 = vadd.f32 %v444_v34, %v438_v35  ;;  %v849_v37 = vpop.f32.mrb[9].mxu0 }
 0xc06   :  { %v441_v38 = vpop.f32.mrb[10].mxu0 }
 0xc07   :  { %918 = vtanh.f32 %v445_v36  ;;  %v850_v39 = vpop.f32.mrb[11].mxu0  ;;  %v768_v41 = vmul.f32 -1.442695, %v445_v36  ;;  %v690_v38 = vunpack.c.h.bf16 %v562_v14 }
 0xc09   :  { %920 = vpow2.f32 %v768_v41 }
 0xc11   :  { %v919_v40 = vpop.eup %918 }
 0xc12   :  { %455 = vrot.lane.b32.xlu1 %v919_v40, %s1028_s1 }
 0xc13   :  { %v921_v42 = vpop.eup %920 }
 0xc14   :  { %v449_v43 = vadd.f32 1.0, %v921_v42 }
 0xc16   :  { %922 = vrcp.f32 %v449_v43 }
 0xc20   :  { %v923_v44 = vpop.eup %922 }
 0xc21   :  { %v453_v47 = vmul.f32 %v923_v44, %v381_v26 }
 0xc84   :  { %v456_v45 = vpop.permute.xlu1 %455 }
 0xc85   :  { %v458_v46 = vmul.f32 %v923_v44, %v456_v45 }
 0xc87   :  { %460 = vrot.lane.b32.xlu0 %v458_v46, %s1028_s1 }
 0xcf9   :  { %v461_v49 = vpop.permute.xlu0 %460 }
 0xcfa   :  { %v463_v50 = vadd.f32 %v461_v49, %v453_v47 }
 0xcfc   :  { %924 = vtanh.f32 %v463_v50 }
 0xd06   :  { %v925_v51 = vpop.eup %924 }
 0xd07   :  { %466 = vrot.lane.b32.xlu1 %v925_v51, %s1028_s1 }
 0xd79   :  { %v467_v52 = vpop.permute.xlu1 %466 }
 0xd7a   :  { %v469_v53 = vmul.f32 %v923_v44, %v467_v52 }
 0xd7c   :  { %v1164_v54 = vpack.c.bf16 %v469_v53, %v469_v53 }
 0xd7e   :  { %481 = vrot.lane.b32.xlu0 %v1164_v54, %s1023_s19 }
 0xdf0   :  { %v482_v55 = vpop.permute.xlu0 %481 }
 0xdf1   :  { %856 = vmatmul.mubr.msk.bf16.vlgmr.msra.gmra.mrb[8].mxu1 %vm45_vm0, %v482_v55 }
 0xdf2   :  { %868 = vmatpush3.bf16.msra.mxu1 %v1086_v1  ;;  %871 = vmatprep.mubr.msk.bf16.mxu1 %vm1027_vm1, %v1026_v0 }
 0xdf3   :  { %869 = vmatprep.subr.bf16.mxu1 %v1026_v0 }
 0xdf6   :  { %870 = vmatpush3.bf16.msra.mxu1 %v1089_v2 }
 0xec4   :  { %v520_v57 = vpop.f32.mrb[8].mxu1 }
 0xec5   :  { %v527_v58 = vadd.f32 %v526_v56, %v520_v57  ;;  %v857_v59 = vpop.f32.mrb[9].mxu1 }
 0xec6   :  { %v523_v60 = vpop.f32.mrb[10].mxu1 }
 0xec7   :  { %926 = vtanh.f32 %v527_v58  ;;  %v858_v61 = vpop.f32.mrb[11].mxu1  ;;  %v771_v63 = vmul.f32 -1.442695, %v527_v58 }
 0xec9   :  { %928 = vpow2.f32 %v771_v63 }
 0xed1   :  { %v927_v62 = vpop.eup %926 }
 0xed2   :  { %537 = vrot.lane.b32.xlu1 %v927_v62, %s1028_s1 }
 0xed3   :  { %v929_v1 = vpop.eup %928 }
 0xed4   :  { %v531_v3 = vadd.f32 1.0, %v929_v1 }
 0xed6   :  { %930 = vrcp.f32 %v531_v3 }
 0xee0   :  { %v931_v4 = vpop.eup %930 }
 0xee1   :  { %v535_v2 = vmul.f32 %v931_v4, %v463_v50 }
 0xf44   :  { %v538_v5 = vpop.permute.xlu1 %537 }
 0xf45   :  { %v540_v0 = vmul.f32 %v931_v4, %v538_v5 }
 0xf47   :  { %542 = vrot.lane.b32.xlu0 %v540_v0, %s1028_s1 }
 0xfb9   :  { %v543_v6 = vpop.permute.xlu0 %542 }
 0xfba   :  { %v545_v7 = vadd.f32 %v543_v6, %v535_v2 }
 0xfbc   :  { %932 = vtanh.f32 %v545_v7 }
 0xfc6   :  { %v933_v8 = vpop.eup %932 }
 0xfc7   :  { %548 = vrot.lane.b32.xlu1 %v933_v8, %s1028_s1 }
0x1039   :  { %v549_v10 = vpop.permute.xlu1 %548 }
0x103a   :  { %v551_v11 = vmul.f32 %v931_v4, %v549_v10 }
0x103c   :  { %v1177_v12 = vpack.c.bf16 %v551_v11, %v551_v11 }
0x103e   :  { %563 = vrot.lane.b32.xlu0 %v1177_v12, %s1023_s19 }
0x10b0   :  { %v564_v13 = vpop.permute.xlu0 %563 }
0x10b1   :  { %864 = vmatmul.mubr.msk.bf16.vlgmr.msra.gmra.mrb[12].mxu0 %vm45_vm0, %v564_v13 }
0x1184   :  { %v602_v16 = vpop.f32.mrb[12].mxu0 }
0x1185   :  { %v609_v17 = vadd.f32 %v608_v15, %v602_v16  ;;  %v865_v18 = vpop.f32.mrb[13].mxu0 }
0x1186   :  { %v605_v19 = vpop.f32.mrb[14].mxu0 }
0x1187   :  { %934 = vtanh.f32 %v609_v17  ;;  %v866_v20 = vpop.f32.mrb[15].mxu0  ;;  %v774_v22 = vmul.f32 -1.442695, %v609_v17 }
0x1189   :  { %936 = vpow2.f32 %v774_v22 }
0x1191   :  { %v935_v21 = vpop.eup %934 }
0x1192   :  { %619 = vrot.lane.b32.xlu1 %v935_v21, %s1028_s1 }
0x1193   :  { %v937_v23 = vpop.eup %936 }
0x1194   :  { %v613_v24 = vadd.f32 1.0, %v937_v23 }
0x1196   :  { %938 = vrcp.f32 %v613_v24 }
0x11a0   :  { %v939_v25 = vpop.eup %938 }
0x11a1   :  { %v617_v29 = vmul.f32 %v939_v25, %v545_v7 }
0x1204   :  { %v620_v26 = vpop.permute.xlu1 %619 }
0x1205   :  { %v622_v28 = vmul.f32 %v939_v25, %v620_v26 }
0x1207   :  { %624 = vrot.lane.b32.xlu0 %v622_v28, %s1028_s1 }
0x1279   :  { %v625_v30 = vpop.permute.xlu0 %624 }
0x127a   :  { %v627_v32 = vadd.f32 %v625_v30, %v617_v29 }
0x127c   :  { %940 = vtanh.f32 %v627_v32 }
0x1286   :  { %v941_v33 = vpop.eup %940 }
0x1287   :  { %630 = vrot.lane.b32.xlu1 %v941_v33, %s1028_s1 }
0x12f9   :  { %v631_v34 = vpop.permute.xlu1 %630 }
0x12fa   :  { %v633_v35 = vmul.f32 %v939_v25, %v631_v34 }
0x12fc   :  { %v634_v36 = vpack.c.bf16 %v633_v35, %v633_v35 }
0x12fe   :  { %645 = vrot.lane.b32.xlu0 %v634_v36, %s1023_s19 }
0x1370   :  { %v646_v37 = vpop.permute.xlu0 %645 }
0x1371   :  { %872 = vmatmul.mubr.msk.bf16.vlgmr.msra.gmra.mrb[12].mxu1 %vm45_vm0, %v646_v37 }
0x1444   :  { %v684_v39 = vpop.f32.mrb[12].mxu1 }
0x1445   :  { %v691_v40 = vadd.f32 %v690_v38, %v684_v39  ;;  %v873_v41 = vpop.f32.mrb[13].mxu1 }
0x1446   :  { %v687_v42 = vpop.f32.mrb[14].mxu1 }
0x1447   :  { %942 = vtanh.f32 %v691_v40  ;;  %v874_v43 = vpop.f32.mrb[15].mxu1  ;;  %v777_v45 = vmul.f32 -1.442695, %v691_v40 }
0x1449   :  { %944 = vpow2.f32 %v777_v45 }
0x1451   :  { %v943_v44 = vpop.eup %942 }
0x1452   :  { %701 = vrot.lane.b32.xlu1 %v943_v44, %s1028_s1 }
0x1453   :  { %v945_v46 = vpop.eup %944 }
0x1454   :  { %v695_v47 = vadd.f32 1.0, %v945_v46 }
0x1456   :  { %946 = vrcp.f32 %v695_v47 }
0x1460   :  { %v947_v49 = vpop.eup %946 }
0x1461   :  { %v699_v52 = vmul.f32 %v947_v49, %v627_v32 }
0x14c4   :  { %v702_v50 = vpop.permute.xlu1 %701 }
0x14c5   :  { %v704_v51 = vmul.f32 %v947_v49, %v702_v50 }
0x14c7   :  { %706 = vrot.lane.b32.xlu0 %v704_v51, %s1028_s1 }
0x14cb   :  { %146 = vrot.lane.b32.xlu0 %v1109_v27, %s1023_s19 }
0x14cf   :  { %310 = vrot.lane.b32.xlu0 %v1137_v9, %s1023_s19 }
0x14d3   :  { %474 = vrot.lane.b32.xlu0 %v1164_v54, %s1023_s19 }
0x14d7   :  { %638 = vrot.lane.b32.xlu0 %v634_v36, %s1023_s19 }
0x1539   :  { %v707_v53 = vpop.permute.xlu0 %706 }
0x153a   :  { %v709_v55 = vadd.f32 %v707_v53, %v699_v52 }
0x153c   :  { %948 = vtanh.f32 %v709_v55 }
0x153d   :  { %v147_v56 = vpop.permute.xlu0 %146 }
0x153e   :  { %150 = vst.msk [vmem:[#allocation9] sm:$0xf] %vm149_vm2, %v147_v56 }
0x1541   :  { %v311_v57 = vpop.permute.xlu0 %310 }
0x1542   :  { %314 = vst.msk [vmem:[#allocation9 + $0x8] sm:$0xf] %vm149_vm2, %v311_v57 }
0x1545   :  { %v475_v27 = vpop.permute.xlu0 %474 }
0x1546   :  { %v949_v58 = vpop.eup %948  ;;  %478 = vst.msk [vmem:[#allocation9 + $0x10] sm:$0xf] %vm149_vm2, %v475_v27 }
0x1547   :  { %712 = vrot.lane.b32.xlu1 %v949_v58, %s1028_s1 }
0x1549   :  { %v639_v9 = vpop.permute.xlu0 %638 }
0x154a   :  { %642 = vst.msk [vmem:[#allocation9 + $0x18] sm:$0xf] %vm149_vm2, %v639_v9 }
0x154b   :  { %228 = vrot.lane.b32.xlu1 %v1123_v48, %s1023_s19 }
0x154f   :  { %392 = vrot.lane.b32.xlu1 %v1151_v31, %s1023_s19 }
0x1553   :  { %556 = vrot.lane.b32.xlu1 %v1177_v12, %s1023_s19 }
0x15b9   :  { %v713_v54 = vpop.permute.xlu1 %712 }
0x15ba   :  { %v715_v59 = vmul.f32 %v947_v49, %v713_v54 }
0x15bc   :  { %726 = vrot.lane.b32.xlu0 %v715_v59, %s1023_s19  ;;  %v786_v60 = vpack.c.bf16 %v715_v59, %v715_v59 }
0x15bd   :  { %v229_v61 = vpop.permute.xlu1 %228 }
0x15be   :  { %232 = vst.msk [vmem:[#allocation9 + $0x4] sm:$0xf] %vm149_vm2, %v229_v61  ;;  %720 = vrot.lane.b32.xlu1 %v786_v60, %s1023_s19 }
0x15c1   :  { %v393_v62 = vpop.permute.xlu1 %392 }
0x15c2   :  { %396 = vst.msk [vmem:[#allocation9 + $0xc] sm:$0xf] %vm149_vm2, %v393_v62  ;;  %731 = vrot.lane.b32.xlu1 %v709_v55, %s1029_s6 }
0x15c5   :  { %v557_v48 = vpop.permute.xlu1 %556 }
0x15c6   :  { %560 = vst.msk [vmem:[#allocation9 + $0x14] sm:$0xf] %vm149_vm2, %v557_v48 }
0x162e   :  { %v727_v31 = vpop.permute.xlu0 %726 }
0x162f   :  { %729 = vst.msk [vmem:[#allocation2] sm:$0xff] %vm45_vm0, %v727_v31 }
0x1630   :  { %v721_v63 = vpop.permute.xlu1 %720 }
0x1631   :  { %724 = vst.msk [vmem:[#allocation9 + $0x1c] sm:$0xf] %vm149_vm2, %v721_v63 }
0x1632   :  { %1005 = shalt.err (!%p1002_p6)
}
0x1633   :  { %s1006_s12 = scalar_lea.hbm %s1232_s2, 512 }
0x1634   :  { %p1007_p7 = scmp.ne.s32.totalorder %s1232_s2, %s1006_s12  ;;  %p1010_p8 = scmp.lt.u32.totalorder %s1006_s12, %s1232_s2 }
0x1636   :  { %p1012_p9 = pnand %p1010_p8, %p1007_p7 }
0x1638   :  { %1015 = shalt.err (!%p1012_p9)
}
0x1639   :  { %746 = dma.vmem_to_hbm [thread:$0]  %s741_s8, 512, %s1232_s2, [#allocation6], %s1023_s19, %s1023_s19, %s1024_s20   ;;  %v732_v1 = vpop.permute.xlu1 %731 }
0x163a   :  { %734 = vst.msk [vmem:[#allocation3] sm:$0xff] %vm45_vm0, %v732_v1 }
0x163b   :  { %1020 = dma.done.wait [#allocation6], 512  }
0x163c   :  { %1021 = vsyncadd [#allocation6], 4294966784 }
0x163d   :  { %750 = vsyncpa [#allocation5], 1 }
0x163e   :  { %751 = vsyncpa [#allocation8], 1 }
0x163f   :  { %752 = vsyncpa [#allocation6], 1 }

</bundles_post_ra>
